<compile_context>
chip_gen: v6e
topology: v6e:2x2x1
jax: 0.10.0
libtpu: 0.0.40
codegen_flags: <defaults>
</compile_context>

<pallas_src>
import functools

import jax
import jax.numpy as jnp
import numpy as np
from jax.experimental import pallas as pl
from jax.experimental.pallas import tpu as pltpu


LANE = 128   # lane tile: every feature / vocab dim is zero-padded to this
B_PAD = 8    # sublane tile: batch is zero-padded to this


def _round_up(x, m):
    return ((x + m - 1) // m) * m


_VMEM = pl.BlockSpec(memory_space=pltpu.MemorySpace.VMEM)
_SMEM = pl.BlockSpec(memory_space=pltpu.MemorySpace.SMEM)


# ------------------------------ fused kernel --------------------------------

def seq2seq_kernel(coin_ref,                    # SMEM [trg_len] int32
                   src_oh_ref, trg_oh_ref,      # [S,Bp,VSp] / [T,Bp,VTp]
                   enc_emb_ref, dec_emb_ref,    # [VSp,Ep] / [VTp,Ep]
                   enc_wi_ref, enc_wh_ref, enc_bi_ref, enc_bh_ref,
                   dec_wi_ref, dec_wh_ref, dec_bi_ref, dec_bh_ref,
                   fc_w_ref, fc_b_ref,
                   out_ref,                     # [T,Bp,VTp]
                   *, hid_pad, trg_vocab):
    src_len = src_oh_ref.shape[0]
    trg_len, b_pad, v_pad = out_ref.shape
    H = hid_pad

    def gru(x, h, wi_ref, wh_ref, bi_ref, bh_ref):
        # packed gates: one matmul + one bias add per operand (r,z,n slices)
        gi = jnp.dot(x, wi_ref[...], preferred_element_type=jnp.float32) + bi_ref[...]
        gh = jnp.dot(h, wh_ref[...], preferred_element_type=jnp.float32) + bh_ref[...]
        r = jax.nn.sigmoid(gi[:, 0:H] + gh[:, 0:H])
        z = jax.nn.sigmoid(gi[:, H:2 * H] + gh[:, H:2 * H])
        n = jnp.tanh(gi[:, 2 * H:3 * H] + r * gh[:, 2 * H:3 * H])
        return (1.0 - z) * n + z * h

    # ------------------------------ encoder ---------------------------------
    def enc_body(t, h):
        emb = jnp.dot(src_oh_ref[t], enc_emb_ref[...],
                      preferred_element_type=jnp.float32)          # [Bp, Ep]
        return gru(emb, h, enc_wi_ref, enc_wh_ref, enc_bi_ref, enc_bh_ref)

    context = jax.lax.fori_loop(
        0, src_len, enc_body, jnp.zeros((b_pad, H), jnp.float32))

    # ------------------------------ decoder ---------------------------------
    out_ref[...] = jnp.zeros((trg_len, b_pad, v_pad), jnp.float32)  # outputs[0]=0

    lane_i = jax.lax.broadcasted_iota(jnp.int32, (b_pad, v_pad), 1)
    lane_f = lane_i.astype(jnp.float32)
    valid = lane_i < trg_vocab                                      # mask padded vocab

    def dec_body(t, carry):
        hidden, input_oh = carry
        emb = jnp.dot(input_oh, dec_emb_ref[...],
                      preferred_element_type=jnp.float32)           # [Bp, Ep]
        emb_con = jnp.concatenate([emb, context], axis=1)           # [Bp, Ep+Hp]
        hidden = gru(emb_con, hidden,
                     dec_wi_ref, dec_wh_ref, dec_bi_ref, dec_bh_ref)
        fc_in = jnp.concatenate([emb, hidden, context], axis=1)     # [Bp, Ep+2Hp]
        pred = (jnp.dot(fc_in, fc_w_ref[...],
                        preferred_element_type=jnp.float32) + fc_b_ref[...])
        out_ref[t] = pred

        # greedy next token: one-hot of the FIRST maximal real-vocab index
        masked = jnp.where(valid, pred, -jnp.inf)
        mx = jnp.max(masked, axis=1, keepdims=True)
        idx = jnp.min(jnp.where(masked == mx, lane_f, float(v_pad)),
                      axis=1, keepdims=True)
        pred_oh = (lane_f == idx).astype(jnp.float32)

        tf = coin_ref[t].astype(jnp.float32)        # teacher-forcing coin (scalar)
        next_input = tf * trg_oh_ref[t] + (1.0 - tf) * pred_oh
        return hidden, next_input

    jax.lax.fori_loop(1, trg_len, dec_body, (context, trg_oh_ref[0]))


def run_seq2seq_kernel(coins, src_oh, trg_oh, packed, *, hid_pad, trg_vocab):
    trg_len, b_pad, v_pad = trg_oh.shape
    kernel = functools.partial(seq2seq_kernel,
                               hid_pad=hid_pad, trg_vocab=trg_vocab)
    args = (coins, src_oh, trg_oh,
            packed["enc_emb"], packed["dec_emb"],
            packed["enc_wi"], packed["enc_wh"], packed["enc_bi"], packed["enc_bh"],
            packed["dec_wi"], packed["dec_wh"], packed["dec_bi"], packed["dec_bh"],
            packed["fc_w"], packed["fc_b"])
    in_specs = [_SMEM] + [_VMEM] * (len(args) - 1)
    return pl.pallas_call(
        kernel,
        out_shape=jax.ShapeDtypeStruct((trg_len, b_pad, v_pad), jnp.float32),
        in_specs=in_specs,
        out_specs=_VMEM,
    )(*args)


# --------------------------- parameter construction -------------------------

def init_gru_params(key, in_dim, hid_dim):
    ks = jax.random.split(key, 12)
    scale = 1.0 / np.sqrt(hid_dim)
    u = lambda k, shape: jax.random.uniform(k, shape, jnp.float32, -scale, scale)
    return dict(
        wir=u(ks[0], (in_dim, hid_dim)), wiz=u(ks[1], (in_dim, hid_dim)),
        win=u(ks[2], (in_dim, hid_dim)),
        whr=u(ks[3], (hid_dim, hid_dim)), whz=u(ks[4], (hid_dim, hid_dim)),
        whn=u(ks[5], (hid_dim, hid_dim)),
        bir=u(ks[6], (1, hid_dim)), biz=u(ks[7], (1, hid_dim)),
        bin=u(ks[8], (1, hid_dim)),
        bhr=u(ks[9], (1, hid_dim)), bhz=u(ks[10], (1, hid_dim)),
        bhn=u(ks[11], (1, hid_dim)),
    )


def init_seq2seq_params(key, src_vocab, trg_vocab, emb_dim, hid_dim):
    k_enc_emb, k_enc_gru, k_dec_emb, k_dec_gru, k_fc_w, k_fc_b = \
        jax.random.split(key, 6)
    scale_fc = 1.0 / np.sqrt(emb_dim + 2 * hid_dim)
    return dict(
        enc_embedding=jax.random.normal(k_enc_emb, (src_vocab, emb_dim),
                                        jnp.float32) * 0.1,
        enc_gru=init_gru_params(k_enc_gru, emb_dim, hid_dim),
        dec_embedding=jax.random.normal(k_dec_emb, (trg_vocab, emb_dim),
                                        jnp.float32) * 0.1,
        dec_gru=init_gru_params(k_dec_gru, emb_dim + hid_dim, hid_dim),
        fc_w=jax.random.uniform(k_fc_w, (emb_dim + 2 * hid_dim, trg_vocab),
                                jnp.float32, -scale_fc, scale_fc),
        fc_b=jax.random.uniform(k_fc_b, (1, trg_vocab),
                                jnp.float32, -scale_fc, scale_fc),
    )


def pack_params(params, emb_dim, hid_dim, src_vocab, trg_vocab):
    """Pack per-gate GRU weights into [in,3H] / [H,3H] and zero-pad to lane tiles."""
    E, H = emb_dim, hid_dim
    E_pad = _round_up(E, LANE)
    H_pad = _round_up(H, LANE)
    VS_pad = _round_up(src_vocab, LANE)
    VT_pad = _round_up(trg_vocab, LANE)

    def pack_w(gates, row_segments, rows_pad):
        W = jnp.zeros((rows_pad, 3 * H_pad), jnp.float32)
        for g, wg in enumerate(gates):
            c0 = g * H_pad
            for (s0, slen, d0) in row_segments:
                W = W.at[d0:d0 + slen, c0:c0 + H].set(wg[s0:s0 + slen, :])
        return W

    def pack_b(gates):
        b = jnp.zeros((1, 3 * H_pad), jnp.float32)
        for g, bg in enumerate(gates):
            b = b.at[0:1, g * H_pad:g * H_pad + H].set(bg)
        return b

    eg, dg = params["enc_gru"], params["dec_gru"]

    enc_emb = jnp.zeros((VS_pad, E_pad), jnp.float32).at[
        :src_vocab, :E].set(params["enc_embedding"])
    dec_emb = jnp.zeros((VT_pad, E_pad), jnp.float32).at[
        :trg_vocab, :E].set(params["dec_embedding"])

    enc_seg = [(0, E, 0)]                       # encoder GRU input = emb
    dec_seg = [(0, E, 0), (E, H, E_pad)]        # decoder GRU input = [emb ; ctx]
    hid_seg = [(0, H, 0)]

    fc_w = jnp.zeros((E_pad + 2 * H_pad, VT_pad), jnp.float32)
    fc_rows = [(0, E, 0), (E, H, E_pad), (E + H, H, E_pad + H_pad)]
    for (s0, slen, d0) in fc_rows:              # FC input = [emb ; hidden ; ctx]
        fc_w = fc_w.at[d0:d0 + slen, :trg_vocab].set(params["fc_w"][s0:s0 + slen, :])
    fc_b = jnp.zeros((1, VT_pad), jnp.float32).at[0:1, :trg_vocab].set(params["fc_b"])

    return dict(
        enc_emb=enc_emb, dec_emb=dec_emb,
        enc_wi=pack_w((eg["wir"], eg["wiz"], eg["win"]), enc_seg, E_pad),
        enc_wh=pack_w((eg["whr"], eg["whz"], eg["whn"]), hid_seg, H_pad),
        enc_bi=pack_b((eg["bir"], eg["biz"], eg["bin"])),
        enc_bh=pack_b((eg["bhr"], eg["bhz"], eg["bhn"])),
        dec_wi=pack_w((dg["wir"], dg["wiz"], dg["win"]), dec_seg, E_pad + H_pad),
        dec_wh=pack_w((dg["whr"], dg["whz"], dg["whn"]), hid_seg, H_pad),
        dec_bi=pack_b((dg["bir"], dg["biz"], dg["bin"])),
        dec_bh=pack_b((dg["bhr"], dg["bhz"], dg["bhn"])),
        fc_w=fc_w, fc_b=fc_b,
    )


# ------------------------------- forward pass --------------------------------

@functools.partial(jax.jit, static_argnames=("emb_dim", "hid_dim", "src_vocab",
                                             "trg_vocab", "teacher_forcing_ratio"))
def seq2seq_forward(src, trg, params, emb_dim, hid_dim, src_vocab, trg_vocab,
                    teacher_forcing_ratio=0.5, tf_key=None):
    """src: [src_len, B] int32, trg: [trg_len, B] int32 -> [trg_len, B, trg_vocab]."""
    src_len, batch = src.shape
    trg_len = trg.shape[0]
    VS_pad = _round_up(src_vocab, LANE)
    VT_pad = _round_up(trg_vocab, LANE)

    if tf_key is None:
        tf_key = jax.random.PRNGKey(1234)
    # Deterministic teacher-forcing coin flips (replaces python random.random()).
    coins = (jax.random.uniform(tf_key, (trg_len,))
             < teacher_forcing_ratio).astype(jnp.int32)

    def pad_batch(x):                       # [T, B, V] -> [T, B_PAD, V]
        return jnp.pad(x, ((0, 0), (0, B_PAD - batch), (0, 0)))

    src_oh = pad_batch(jax.nn.one_hot(src, VS_pad, dtype=jnp.float32))
    trg_oh = pad_batch(jax.nn.one_hot(trg, VT_pad, dtype=jnp.float32))

    packed = pack_params(params, emb_dim, hid_dim, src_vocab, trg_vocab)
    out = run_seq2seq_kernel(coins, src_oh, trg_oh, packed,
                             hid_pad=_round_up(hid_dim, LANE),
                             trg_vocab=trg_vocab)
    return out[:, :batch, :trg_vocab]


# ---------------------------------- main --------------------------------------

if __name__ == "__main__":
    SRC_VOCAB = 20
    TRG_VOCAB = 24
    EMB_DIM = 16
    HID_DIM = 32
    SRC_LEN = 8
    TRG_LEN = 8
    BATCH = 2

    key = jax.random.PRNGKey(0)
    k_params, k_src, k_trg, k_tf = jax.random.split(key, 4)

    params = init_seq2seq_params(k_params, SRC_VOCAB, TRG_VOCAB, EMB_DIM, HID_DIM)
    src = jax.random.randint(k_src, (SRC_LEN, BATCH), 0, SRC_VOCAB, jnp.int32)
    trg = jax.random.randint(k_trg, (TRG_LEN, BATCH), 0, TRG_VOCAB, jnp.int32)

    outputs = seq2seq_forward(src, trg, params, EMB_DIM, HID_DIM,
                              SRC_VOCAB, TRG_VOCAB,
                              teacher_forcing_ratio=0.5, tf_key=k_tf)
    outputs = jax.block_until_ready(outputs)

    assert outputs.shape == (TRG_LEN, BATCH, TRG_VOCAB)
    assert bool(jnp.all(outputs[0] == 0.0))
    assert bool(jnp.all(jnp.isfinite(outputs)))
    print("KERNEL_OK")
</pallas_src>

<mosaic_0001>
module attributes {stable_mosaic.version = 11 : i64} {
  func.func @seq2seq_kernel(%arg0: memref<8xi32, #tpu.memory_space<smem>>, %arg1: memref<8x8x128xf32, #tpu.memory_space<vmem>>, %arg2: memref<8x8x128xf32, #tpu.memory_space<vmem>>, %arg3: memref<128x128xf32, #tpu.memory_space<vmem>>, %arg4: memref<128x128xf32, #tpu.memory_space<vmem>>, %arg5: memref<128x384xf32, #tpu.memory_space<vmem>>, %arg6: memref<128x384xf32, #tpu.memory_space<vmem>>, %arg7: memref<1x384xf32, #tpu.memory_space<vmem>>, %arg8: memref<1x384xf32, #tpu.memory_space<vmem>>, %arg9: memref<256x384xf32, #tpu.memory_space<vmem>>, %arg10: memref<128x384xf32, #tpu.memory_space<vmem>>, %arg11: memref<1x384xf32, #tpu.memory_space<vmem>>, %arg12: memref<1x384xf32, #tpu.memory_space<vmem>>, %arg13: memref<384x128xf32, #tpu.memory_space<vmem>>, %arg14: memref<1x128xf32, #tpu.memory_space<vmem>>, %arg15: memref<8x8x128xf32, #tpu.memory_space<vmem>>) attributes {dimension_semantics = [], scalar_prefetch = 0 : i64, scratch_operands = 0 : i64, tpu.core_type = #tpu.core_type<tc>} {
    %cst = arith.constant 0.000000e+00 : f32
    %0 = vector.broadcast %cst : f32 to vector<8x128xf32>
    %c0_i32 = arith.constant 0 : i32
    %c8_i32 = arith.constant 8 : i32
    %1 = arith.addi %c0_i32, %c8_i32 : i32
    %c1_i32 = arith.constant 1 : i32
    %2 = scf.for %arg16 = %c0_i32 to %1 step %c1_i32 iter_args(%arg17 = %0) -> (vector<8x128xf32>)  : i32 {
      %13 = arith.index_cast %arg16 : i32 to index
      %c0_10 = arith.constant 0 : index
      %c0_11 = arith.constant 0 : index
      %14 = vector.load %arg1[%13, %c0_10, %c0_11] : memref<8x8x128xf32, #tpu.memory_space<vmem>>, vector<1x8x128xf32>
      %15 = vector.shape_cast %14 : vector<1x8x128xf32> to vector<8x128xf32>
      %c0_12 = arith.constant 0 : index
      %c0_13 = arith.constant 0 : index
      %16 = vector.load %arg3[%c0_12, %c0_13] : memref<128x128xf32, #tpu.memory_space<vmem>>, vector<128x128xf32>
      %cst_14 = arith.constant dense<0.000000e+00> : vector<8x128xf32>
      %17 = tpu.matmul %15, %16, %cst_14 {dimension_numbers = #tpu.dot_dimension_numbers<[1], [0], [0], [1], [0, 0, 1, 1], [], []>} : vector<8x128xf32>, vector<128x128xf32>, vector<8x128xf32> -> vector<8x128xf32>
      %c0_15 = arith.constant 0 : index
      %c0_16 = arith.constant 0 : index
      %18 = vector.load %arg5[%c0_15, %c0_16] : memref<128x384xf32, #tpu.memory_space<vmem>>, vector<128x384xf32>
      %cst_17 = arith.constant dense<0.000000e+00> : vector<8x384xf32>
      %19 = tpu.matmul %17, %18, %cst_17 {dimension_numbers = #tpu.dot_dimension_numbers<[1], [0], [0], [1], [0, 0, 1, 1], [], []>} : vector<8x128xf32>, vector<128x384xf32>, vector<8x384xf32> -> vector<8x384xf32>
      %c0_18 = arith.constant 0 : index
      %c0_19 = arith.constant 0 : index
      %20 = vector.load %arg7[%c0_18, %c0_19] : memref<1x384xf32, #tpu.memory_space<vmem>>, vector<1x384xf32>
      %21 = vector.broadcast %20 : vector<1x384xf32> to vector<8x384xf32>
      %22 = arith.addf %19, %21 : vector<8x384xf32>
      %c0_20 = arith.constant 0 : index
      %c0_21 = arith.constant 0 : index
      %23 = vector.load %arg6[%c0_20, %c0_21] : memref<128x384xf32, #tpu.memory_space<vmem>>, vector<128x384xf32>
      %cst_22 = arith.constant dense<0.000000e+00> : vector<8x384xf32>
      %24 = tpu.matmul %arg17, %23, %cst_22 {dimension_numbers = #tpu.dot_dimension_numbers<[1], [0], [0], [1], [0, 0, 1, 1], [], []>} : vector<8x128xf32>, vector<128x384xf32>, vector<8x384xf32> -> vector<8x384xf32>
      %c0_23 = arith.constant 0 : index
      %c0_24 = arith.constant 0 : index
      %25 = vector.load %arg8[%c0_23, %c0_24] : memref<1x384xf32, #tpu.memory_space<vmem>>, vector<1x384xf32>
      %26 = vector.broadcast %25 : vector<1x384xf32> to vector<8x384xf32>
      %27 = arith.addf %24, %26 : vector<8x384xf32>
      %28 = vector.extract_strided_slice %22 {offsets = [0, 0], sizes = [8, 128], strides = [1, 1]} : vector<8x384xf32> to vector<8x128xf32>
      %29 = vector.extract_strided_slice %27 {offsets = [0, 0], sizes = [8, 128], strides = [1, 1]} : vector<8x384xf32> to vector<8x128xf32>
      %30 = arith.addf %28, %29 : vector<8x128xf32>
      %31 = arith.negf %30 : vector<8x128xf32>
      %32 = math.exp %31 : vector<8x128xf32>
      %cst_25 = arith.constant 1.000000e+00 : f32
      %33 = vector.broadcast %cst_25 : f32 to vector<8x128xf32>
      %34 = arith.addf %33, %32 : vector<8x128xf32>
      %35 = arith.divf %33, %34 : vector<8x128xf32>
      %36 = vector.extract_strided_slice %22 {offsets = [0, 128], sizes = [8, 128], strides = [1, 1]} : vector<8x384xf32> to vector<8x128xf32>
      %37 = vector.extract_strided_slice %27 {offsets = [0, 128], sizes = [8, 128], strides = [1, 1]} : vector<8x384xf32> to vector<8x128xf32>
      %38 = arith.addf %36, %37 : vector<8x128xf32>
      %39 = arith.negf %38 : vector<8x128xf32>
      %40 = math.exp %39 : vector<8x128xf32>
      %cst_26 = arith.constant 1.000000e+00 : f32
      %41 = vector.broadcast %cst_26 : f32 to vector<8x128xf32>
      %42 = arith.addf %41, %40 : vector<8x128xf32>
      %43 = arith.divf %41, %42 : vector<8x128xf32>
      %44 = vector.extract_strided_slice %22 {offsets = [0, 256], sizes = [8, 128], strides = [1, 1]} : vector<8x384xf32> to vector<8x128xf32>
      %45 = vector.extract_strided_slice %27 {offsets = [0, 256], sizes = [8, 128], strides = [1, 1]} : vector<8x384xf32> to vector<8x128xf32>
      %46 = arith.mulf %35, %45 : vector<8x128xf32>
      %47 = arith.addf %44, %46 : vector<8x128xf32>
      %48 = math.tanh %47 : vector<8x128xf32>
      %cst_27 = arith.constant 1.000000e+00 : f32
      %49 = vector.broadcast %cst_27 : f32 to vector<8x128xf32>
      %50 = arith.subf %49, %43 : vector<8x128xf32>
      %51 = arith.mulf %50, %48 : vector<8x128xf32>
      %52 = arith.mulf %43, %arg17 : vector<8x128xf32>
      %53 = arith.addf %51, %52 : vector<8x128xf32>
      scf.yield %53 : vector<8x128xf32>
    }
    %c8_i32_0 = arith.constant 8 : i32
    %cst_1 = arith.constant 0.000000e+00 : f32
    %3 = vector.broadcast %cst_1 : f32 to vector<8x8x128xf32>
    %c0 = arith.constant 0 : index
    %c0_2 = arith.constant 0 : index
    %c0_3 = arith.constant 0 : index
    %4 = vector.load %arg15[%c0, %c0_2, %c0_3] : memref<8x8x128xf32, #tpu.memory_space<vmem>>, vector<8x8x128xf32>
    tpu.vector_store %arg15[%c0, %c0_2, %c0_3], %3 {strides = array<i32>} : memref<8x8x128xf32, #tpu.memory_space<vmem>>, vector<8x8x128xf32>,
    %5 = tpu.iota {dimensions = array<i32: 1>} : vector<8x128xi32>
    %6 = arith.sitofp %5 : vector<8x128xi32> to vector<8x128xf32>
    %c24_i32 = arith.constant 24 : i32
    %7 = vector.broadcast %c24_i32 : i32 to vector<8x128xi32>
    %8 = arith.cmpi slt, %5, %7 : vector<8x128xi32>
    %c0_4 = arith.constant 0 : index
    %c0_5 = arith.constant 0 : index
    %c0_6 = arith.constant 0 : index
    %9 = vector.load %arg2[%c0_4, %c0_5, %c0_6] : memref<8x8x128xf32, #tpu.memory_space<vmem>>, vector<1x8x128xf32>
    %10 = vector.shape_cast %9 : vector<1x8x128xf32> to vector<8x128xf32>
    %c1_i32_7 = arith.constant 1 : i32
    %c7_i32 = arith.constant 7 : i32
    %11 = arith.addi %c1_i32_7, %c7_i32 : i32
    %c1_i32_8 = arith.constant 1 : i32
    %12:2 = scf.for %arg16 = %c1_i32_7 to %11 step %c1_i32_8 iter_args(%arg17 = %2, %arg18 = %10) -> (vector<8x128xf32>, vector<8x128xf32>)  : i32 {
      %c0_10 = arith.constant 0 : index
      %c0_11 = arith.constant 0 : index
      %13 = vector.load %arg4[%c0_10, %c0_11] : memref<128x128xf32, #tpu.memory_space<vmem>>, vector<128x128xf32>
      %cst_12 = arith.constant dense<0.000000e+00> : vector<8x128xf32>
      %14 = tpu.matmul %arg18, %13, %cst_12 {dimension_numbers = #tpu.dot_dimension_numbers<[1], [0], [0], [1], [0, 0, 1, 1], [], []>} : vector<8x128xf32>, vector<128x128xf32>, vector<8x128xf32> -> vector<8x128xf32>
      %15 = tpu.concatenate %14, %2 in 1 : vector<8x128xf32>, vector<8x128xf32> -> vector<8x256xf32>
      %c0_13 = arith.constant 0 : index
      %c0_14 = arith.constant 0 : index
      %16 = vector.load %arg9[%c0_13, %c0_14] : memref<256x384xf32, #tpu.memory_space<vmem>>, vector<256x384xf32>
      %cst_15 = arith.constant dense<0.000000e+00> : vector<8x384xf32>
      %17 = tpu.matmul %15, %16, %cst_15 {dimension_numbers = #tpu.dot_dimension_numbers<[1], [0], [0], [1], [0, 0, 1, 1], [], []>} : vector<8x256xf32>, vector<256x384xf32>, vector<8x384xf32> -> vector<8x384xf32>
      %c0_16 = arith.constant 0 : index
      %c0_17 = arith.constant 0 : index
      %18 = vector.load %arg11[%c0_16, %c0_17] : memref<1x384xf32, #tpu.memory_space<vmem>>, vector<1x384xf32>
      %19 = vector.broadcast %18 : vector<1x384xf32> to vector<8x384xf32>
      %20 = arith.addf %17, %19 : vector<8x384xf32>
      %c0_18 = arith.constant 0 : index
      %c0_19 = arith.constant 0 : index
      %21 = vector.load %arg10[%c0_18, %c0_19] : memref<128x384xf32, #tpu.memory_space<vmem>>, vector<128x384xf32>
      %cst_20 = arith.constant dense<0.000000e+00> : vector<8x384xf32>
      %22 = tpu.matmul %arg17, %21, %cst_20 {dimension_numbers = #tpu.dot_dimension_numbers<[1], [0], [0], [1], [0, 0, 1, 1], [], []>} : vector<8x128xf32>, vector<128x384xf32>, vector<8x384xf32> -> vector<8x384xf32>
      %c0_21 = arith.constant 0 : index
      %c0_22 = arith.constant 0 : index
      %23 = vector.load %arg12[%c0_21, %c0_22] : memref<1x384xf32, #tpu.memory_space<vmem>>, vector<1x384xf32>
      %24 = vector.broadcast %23 : vector<1x384xf32> to vector<8x384xf32>
      %25 = arith.addf %22, %24 : vector<8x384xf32>
      %26 = vector.extract_strided_slice %20 {offsets = [0, 0], sizes = [8, 128], strides = [1, 1]} : vector<8x384xf32> to vector<8x128xf32>
      %27 = vector.extract_strided_slice %25 {offsets = [0, 0], sizes = [8, 128], strides = [1, 1]} : vector<8x384xf32> to vector<8x128xf32>
      %28 = arith.addf %26, %27 : vector<8x128xf32>
      %29 = arith.negf %28 : vector<8x128xf32>
      %30 = math.exp %29 : vector<8x128xf32>
      %cst_23 = arith.constant 1.000000e+00 : f32
      %31 = vector.broadcast %cst_23 : f32 to vector<8x128xf32>
      %32 = arith.addf %31, %30 : vector<8x128xf32>
      %33 = arith.divf %31, %32 : vector<8x128xf32>
      %34 = vector.extract_strided_slice %20 {offsets = [0, 128], sizes = [8, 128], strides = [1, 1]} : vector<8x384xf32> to vector<8x128xf32>
      %35 = vector.extract_strided_slice %25 {offsets = [0, 128], sizes = [8, 128], strides = [1, 1]} : vector<8x384xf32> to vector<8x128xf32>
      %36 = arith.addf %34, %35 : vector<8x128xf32>
      %37 = arith.negf %36 : vector<8x128xf32>
      %38 = math.exp %37 : vector<8x128xf32>
      %cst_24 = arith.constant 1.000000e+00 : f32
      %39 = vector.broadcast %cst_24 : f32 to vector<8x128xf32>
      %40 = arith.addf %39, %38 : vector<8x128xf32>
      %41 = arith.divf %39, %40 : vector<8x128xf32>
      %42 = vector.extract_strided_slice %20 {offsets = [0, 256], sizes = [8, 128], strides = [1, 1]} : vector<8x384xf32> to vector<8x128xf32>
      %43 = vector.extract_strided_slice %25 {offsets = [0, 256], sizes = [8, 128], strides = [1, 1]} : vector<8x384xf32> to vector<8x128xf32>
      %44 = arith.mulf %33, %43 : vector<8x128xf32>
      %45 = arith.addf %42, %44 : vector<8x128xf32>
      %46 = math.tanh %45 : vector<8x128xf32>
      %cst_25 = arith.constant 1.000000e+00 : f32
      %47 = vector.broadcast %cst_25 : f32 to vector<8x128xf32>
      %48 = arith.subf %47, %41 : vector<8x128xf32>
      %49 = arith.mulf %48, %46 : vector<8x128xf32>
      %50 = arith.mulf %41, %arg17 : vector<8x128xf32>
      %51 = arith.addf %49, %50 : vector<8x128xf32>
      %52 = tpu.concatenate %14, %51, %2 in 1 : vector<8x128xf32>, vector<8x128xf32>, vector<8x128xf32> -> vector<8x384xf32>
      %c0_26 = arith.constant 0 : index
      %c0_27 = arith.constant 0 : index
      %53 = vector.load %arg13[%c0_26, %c0_27] : memref<384x128xf32, #tpu.memory_space<vmem>>, vector<384x128xf32>
      %cst_28 = arith.constant dense<0.000000e+00> : vector<8x128xf32>
      %54 = tpu.matmul %52, %53, %cst_28 {dimension_numbers = #tpu.dot_dimension_numbers<[1], [0], [0], [1], [0, 0, 1, 1], [], []>} : vector<8x384xf32>, vector<384x128xf32>, vector<8x128xf32> -> vector<8x128xf32>
      %c0_29 = arith.constant 0 : index
      %c0_30 = arith.constant 0 : index
      %55 = vector.load %arg14[%c0_29, %c0_30] : memref<1x128xf32, #tpu.memory_space<vmem>>, vector<1x128xf32>
      %56 = vector.broadcast %55 : vector<1x128xf32> to vector<8x128xf32>
      %57 = arith.addf %54, %56 : vector<8x128xf32>
      %58 = arith.index_cast %arg16 : i32 to index
      %c0_31 = arith.constant 0 : index
      %c0_32 = arith.constant 0 : index
      %59 = vector.load %arg15[%58, %c0_31, %c0_32] : memref<8x8x128xf32, #tpu.memory_space<vmem>>, vector<1x8x128xf32>
      %60 = vector.shape_cast %59 : vector<1x8x128xf32> to vector<8x128xf32>
      %61 = vector.shape_cast %57 : vector<8x128xf32> to vector<1x8x128xf32>
      tpu.vector_store %arg15[%58, %c0_31, %c0_32], %61 {strides = array<i32>} : memref<8x8x128xf32, #tpu.memory_space<vmem>>, vector<1x8x128xf32>,
      %cst_33 = arith.constant 0xFF800000 : f32
      %62 = vector.broadcast %cst_33 : f32 to vector<8x128xf32>
      %63 = arith.select %8, %57, %62 : vector<8x128xi1>, vector<8x128xf32>
      %cst_34 = arith.constant dense<0xFF800000> : vector<8xf32>
      %64 = vector.multi_reduction <maximumf>, %63, %cst_34 [1] : vector<8x128xf32> to vector<8xf32>
      %65 = vector.shape_cast %64 : vector<8xf32> to vector<8x1xf32>
      %66 = vector.broadcast %65 : vector<8x1xf32> to vector<8x128xf32>
      %67 = arith.cmpf oeq, %63, %66 : vector<8x128xf32>
      %cst_35 = arith.constant 1.280000e+02 : f32
      %68 = vector.broadcast %cst_35 : f32 to vector<8x128xf32>
      %69 = arith.select %67, %6, %68 : vector<8x128xi1>, vector<8x128xf32>
      %cst_36 = arith.constant dense<0x7F800000> : vector<8xf32>
      %70 = vector.multi_reduction <minimumf>, %69, %cst_36 [1] : vector<8x128xf32> to vector<8xf32>
      %71 = vector.shape_cast %70 : vector<8xf32> to vector<8x1xf32>
      %72 = vector.broadcast %71 : vector<8x1xf32> to vector<8x128xf32>
      %73 = arith.cmpf oeq, %6, %72 : vector<8x128xf32>
      %74 = arith.extui %73 : vector<8x128xi1> to vector<8x128xi32>
      %75 = arith.sitofp %74 : vector<8x128xi32> to vector<8x128xf32>
      %76 = arith.index_cast %arg16 : i32 to index
      %77 = memref.load %arg0[%76] : memref<8xi32, #tpu.memory_space<smem>>
      %78 = arith.sitofp %77 : i32 to f32
      %79 = arith.index_cast %arg16 : i32 to index
      %c0_37 = arith.constant 0 : index
      %c0_38 = arith.constant 0 : index
      %80 = vector.load %arg2[%79, %c0_37, %c0_38] : memref<8x8x128xf32, #tpu.memory_space<vmem>>, vector<1x8x128xf32>
      %81 = vector.shape_cast %80 : vector<1x8x128xf32> to vector<8x128xf32>
      %82 = vector.broadcast %78 : f32 to vector<8x128xf32>
      %83 = arith.mulf %82, %81 : vector<8x128xf32>
      %cst_39 = arith.constant 1.000000e+00 : f32
      %84 = arith.subf %cst_39, %78 : f32
      %85 = vector.broadcast %84 : f32 to vector<8x128xf32>
      %86 = arith.mulf %85, %75 : vector<8x128xf32>
      %87 = arith.addf %83, %86 : vector<8x128xf32>
      scf.yield %51, %87 : vector<8x128xf32>, vector<8x128xf32>
    }
    %c7_i32_9 = arith.constant 7 : i32
    return
  }
}

</mosaic_0001>

<bundles_post_ra>
// kernel: seq2seq_forward.1
= control target key start
LH: loop header
LB: loop body
LE: loop exit
PB: predicated region body
PF: predicated region fallthrough
CT: control target
= control target key end

     0   :  { %20 = vsyncpa [#allocation3], 0  ;;  %s3237_s0 = inlined_call_operand.vmem [shape: s32[8], index: 0, kind: input, shape index: {}]   ;;  %s3238_s1 = inlined_call_operand.vmem [shape: f32[8,8,128], index: 1, kind: input, shape index: {}]   ;;  %s3239_s2 = inlined_call_operand.vmem [shape: f32[8,8,128], index: 2, kind: input, shape index: {}]   ;;  %s3240_s3 = inlined_call_operand.vmem [shape: f32[128,128], index: 3, kind: input, shape index: {}]   ;;  %s3241_s4 = inlined_call_operand.vmem [shape: f32[128,128], index: 4, kind: input, shape index: {}]   ;;  %s3242_s5 = inlined_call_operand.vmem [shape: f32[128,384], index: 5, kind: input, shape index: {}]   ;;  %s3243_s6 = inlined_call_operand.vmem [shape: f32[128,384], index: 6, kind: input, shape index: {}]   ;;  %s3244_s7 = inlined_call_operand.vmem [shape: f32[1,384], index: 7, kind: input, shape index: {}]   ;;  %s3245_s8 = inlined_call_operand.vmem [shape: f32[1,384], index: 8, kind: input, shape index: {}]   ;;  %s3246_s9 = inlined_call_operand.vmem [shape: f32[256,384], index: 9, kind: input, shape index: {}]   ;;  %s3247_s10 = inlined_call_operand.vmem [shape: f32[128,384], index: 10, kind: input, shape index: {}]   ;;  %s3248_s11 = inlined_call_operand.vmem [shape: f32[1,384], index: 11, kind: input, shape index: {}]   ;;  %s3249_s12 = inlined_call_operand.vmem [shape: f32[1,384], index: 12, kind: input, shape index: {}]   ;;  %s3250_s13 = inlined_call_operand.vmem [shape: f32[384,128], index: 13, kind: input, shape index: {}]   ;;  %s3251_s14 = inlined_call_operand.vmem [shape: f32[1,128], index: 14, kind: input, shape index: {}]   ;;  %s3252_s15 = inlined_call_operand.vmem [shape: f32[8,8,128], index: 15, kind: output, shape index: {}]  }
   0x1   :  { %s27_s20 = sshll.u32 %s3237_s0, 4  ;;  %s28_s20 = int_to_ptr.vmem [resolvable:$true] %s27_s20 }
   0x2   :  { %s1884_s21 = scalar_lea.vmem %s28_s20, 16  ;;  %p1889_p1 = scmp.lt.s32.totalorder %s28_s20, %s28_s20 }
   0x3   :  { %p1885_p0 = scmp.ne.s32.totalorder %s28_s20, %s1884_s21  ;;  %p1890_p2 = scmp.lt.s32.totalorder %s1884_s21, %s1884_s21 }
   0x5   :  { %p1891_p3 = por %p1890_p2, %p1889_p1 }
   0x7   :  { %p1892_p4 = pnand %p1891_p3, %p1885_p0 }
   0x9   :  { %1895 = shalt.err (!%p1892_p4)
}
   0xa   :  { %s1938_s22 = smov [#allocation2]  }
   0xb   :  { %30 = dma.vmem_to_smem %s28_s20, 16, %s1938_s22, [#allocation3]  }
   0xc   :  { %1916 = dma.done.wait [#allocation3], 16  }
   0xd   :  { %1917 = vsyncadd [#allocation3], 4294967280 }
   0xe   :  { %62 = sfence }
   0xf   :  { %v2027_v0 = vmov 0.0   ;;  %s2029_s23 = smov 0  }
  0x10 LB: > { %v88_v1 = vld [vmem:[%s3240_s3 + $0x78] sm:$0xff]  ;;  %v1939_v2 = vmov 0.0   ;;  %v87_v3 = vld [vmem:[%s3240_s3 + $0x70] sm:$0xff]  ;;  %vm1940_vm0 = vmmov 0   ;;  %v86_v4 = vld [vmem:[%s3240_s3 + $0x68] sm:$0xff]  ;;  %s1428_s16 = sshll.u32 %s1924_s23, 3  ;;  %s1924_s23 = sphi %s2029_s23, %s68_s23   ;;  %v1920_v0 = vphi %v2027_v0, %v3254_v0  }
  0x11   : > { %1608 = vmatprep.subr.mxu0 %v1939_v2  ;;  %1640 = vmatprep.mubr.msk.f32.mxu0 %vm1940_vm0, %v1939_v2  ;;  %v85_v5 = vld [vmem:[%s3240_s3 + $0x60] sm:$0xff]  ;;  %v205_v6 = vld [vmem:[%s3242_s5 + $0x170] sm:$0xff]  ;;  %v204_v7 = vld [vmem:[%s3242_s5 + $0x168] sm:$0xff]  ;;  %s71_s29 = scalar_lea.vmem %s3238_s1, %s1428_s16  ;;  %s68_s23 = sadd.s32 1, %s1924_s23  }
  0x12   : > { %1609 = vmatpush3.msra.mxu0 %v88_v1  ;;  %288 = vmatprep.mubr.f32.mxu1 %v1939_v2  ;;  %v202_v8 = vld [vmem:[%s3242_s5 + $0x158] sm:$0xff]  ;;  %v201_v10 = vld [vmem:[%s3242_s5 + $0x150] sm:$0xff]  ;;  %v199_v11 = vld [vmem:[%s3242_s5 + $0x140] sm:$0xff]  ;;  %p65_p5 = scmp.ge.s32.totalorder %s68_s23, 8  }
  0x13   : > { %1610 = vmatprep.subr.mxu0 %v1939_v2  ;;  %224 = vmatprep.subr.mxu1 %v205_v6  ;;  %v84_v9 = vld [vmem:[%s3240_s3 + $0x58] sm:$0xff]  ;;  %v83_v13 = vld [vmem:[%s3240_s3 + $0x50] sm:$0xff]  ;;  %v196_v14 = vld [vmem:[%s3242_s5 + $0x128] sm:$0xff]  ;;  %s2498_s26 = smov (%p65_p5), 1  }
  0x14   : > { %1611 = vmatpush3.msra.mxu0 %v87_v3  ;;  %225 = vmatpush1.msra.mxu1 %v204_v7  ;;  %v198_v12 = vld [vmem:[%s3242_s5 + $0x138] sm:$0xff]  ;;  %v195_v15 = vld [vmem:[%s3242_s5 + $0x120] sm:$0xff]  ;;  %v82_v16 = vld [vmem:[%s3240_s3 + $0x48] sm:$0xff] }
  0x15   : > { %1612 = vmatprep.subr.mxu0 %v1939_v2  ;;  %226 = vmatprep.subr.mxu1 %v202_v8  ;;  %v193_v17 = vld [vmem:[%s3242_s5 + $0x110] sm:$0xff]  ;;  %v192_v18 = vld [vmem:[%s3242_s5 + $0x108] sm:$0xff]  ;;  %v81_v19 = vld [vmem:[%s3240_s3 + $0x40] sm:$0xff] }
  0x16   : > { %1613 = vmatpush3.msra.mxu0 %v86_v4  ;;  %227 = vmatpush1.msra.mxu1 %v201_v10  ;;  %v190_v20 = vld [vmem:[%s3242_s5 + $0xf8] sm:$0xff]  ;;  %v189_v21 = vld [vmem:[%s3242_s5 + $0xf0] sm:$0xff]  ;;  %v187_v23 = vld [vmem:[%s3242_s5 + $0xe0] sm:$0xff] }
  0x17   : > { %1614 = vmatprep.subr.mxu0 %v1939_v2  ;;  %228 = vmatprep.subr.mxu1 %v199_v11  ;;  %v80_v22 = vld [vmem:[%s3240_s3 + $0x38] sm:$0xff]  ;;  %v79_v25 = vld [vmem:[%s3240_s3 + $0x30] sm:$0xff]  ;;  %v184_v26 = vld [vmem:[%s3242_s5 + $0xc8] sm:$0xff] }
  0x18   : > { %1615 = vmatpush3.msra.mxu0 %v85_v5  ;;  %229 = vmatpush1.msra.mxu1 %v198_v12  ;;  %v186_v24 = vld [vmem:[%s3242_s5 + $0xd8] sm:$0xff]  ;;  %v183_v27 = vld [vmem:[%s3242_s5 + $0xc0] sm:$0xff]  ;;  %v78_v28 = vld [vmem:[%s3240_s3 + $0x28] sm:$0xff] }
  0x19   : > { %1616 = vmatprep.subr.mxu0 %v1939_v2  ;;  %230 = vmatprep.subr.mxu1 %v196_v14  ;;  %v181_v29 = vld [vmem:[%s3242_s5 + $0xb0] sm:$0xff]  ;;  %v180_v30 = vld [vmem:[%s3242_s5 + $0xa8] sm:$0xff]  ;;  %v77_v31 = vld [vmem:[%s3240_s3 + $0x20] sm:$0xff] }
  0x1a   : > { %1617 = vmatpush3.msra.mxu0 %v84_v9  ;;  %231 = vmatpush1.msra.mxu1 %v195_v15  ;;  %v178_v32 = vld [vmem:[%s3242_s5 + $0x98] sm:$0xff]  ;;  %v177_v33 = vld [vmem:[%s3242_s5 + $0x90] sm:$0xff]  ;;  %v175_v35 = vld [vmem:[%s3242_s5 + $0x80] sm:$0xff] }
  0x1b   : > { %1618 = vmatprep.subr.mxu0 %v1939_v2  ;;  %232 = vmatprep.subr.mxu1 %v193_v17  ;;  %v76_v34 = vld [vmem:[%s3240_s3 + $0x18] sm:$0xff]  ;;  %v75_v37 = vld [vmem:[%s3240_s3 + $0x10] sm:$0xff]  ;;  %v172_v38 = vld [vmem:[%s3242_s5 + $0x68] sm:$0xff] }
  0x1c   : > { %1619 = vmatpush3.msra.mxu0 %v83_v13  ;;  %233 = vmatpush1.msra.mxu1 %v192_v18  ;;  %v174_v36 = vld [vmem:[%s3242_s5 + $0x78] sm:$0xff]  ;;  %v171_v39 = vld [vmem:[%s3242_s5 + $0x60] sm:$0xff]  ;;  %v74_v40 = vld [vmem:[%s3240_s3 + $0x8] sm:$0xff] }
  0x1d   : > { %1620 = vmatprep.subr.mxu0 %v1939_v2  ;;  %234 = vmatprep.subr.mxu1 %v190_v20  ;;  %v169_v41 = vld [vmem:[%s3242_s5 + $0x50] sm:$0xff]  ;;  %v168_v42 = vld [vmem:[%s3242_s5 + $0x48] sm:$0xff]  ;;  %v73_v43 = vld [vmem:[%s3240_s3] sm:$0xff] }
  0x1e   : > { %1621 = vmatpush3.msra.mxu0 %v82_v16  ;;  %235 = vmatpush1.msra.mxu1 %v189_v21  ;;  %v166_v44 = vld [vmem:[%s3242_s5 + $0x38] sm:$0xff]  ;;  %v72_v45 = vld [vmem:[%s71_s29] sm:$0xff]  ;;  %v165_v47 = vld [vmem:[%s3242_s5 + $0x30] sm:$0xff] }
  0x1f   : > { %1622 = vmatprep.subr.mxu0 %v1939_v2  ;;  %236 = vmatprep.subr.mxu1 %v187_v23  ;;  %v206_v46 = vld [vmem:[%s3242_s5 + $0x178] sm:$0xff]  ;;  %v163_v48 = vld [vmem:[%s3242_s5 + $0x20] sm:$0xff]  ;;  %v160_v51 = vld [vmem:[%s3242_s5 + $0x8] sm:$0xff] }
  0x20   : > { %1623 = vmatpush3.msra.mxu0 %v81_v19  ;;  %237 = vmatpush1.msra.mxu1 %v186_v24  ;;  %v203_v49 = vld [vmem:[%s3242_s5 + $0x160] sm:$0xff]  ;;  %v162_v50 = vld [vmem:[%s3242_s5 + $0x18] sm:$0xff]  ;;  %v200_v52 = vld [vmem:[%s3242_s5 + $0x148] sm:$0xff] }
  0x21   : > { %1624 = vmatprep.subr.mxu0 %v1939_v2  ;;  %238 = vmatprep.subr.mxu1 %v184_v26  ;;  %v159_v53 = vld [vmem:[%s3242_s5] sm:$0xff]  ;;  %v197_v54 = vld [vmem:[%s3242_s5 + $0x130] sm:$0xff]  ;;  %v194_v55 = vld [vmem:[%s3242_s5 + $0x118] sm:$0xff] }
  0x22   : > { %1625 = vmatpush3.msra.mxu0 %v80_v22  ;;  %239 = vmatpush1.msra.mxu1 %v183_v27  ;;  %v191_v56 = vld [vmem:[%s3242_s5 + $0x100] sm:$0xff]  ;;  %v188_v57 = vld [vmem:[%s3242_s5 + $0xe8] sm:$0xff]  ;;  %v185_v58 = vld [vmem:[%s3242_s5 + $0xd0] sm:$0xff] }
  0x23   : > { %1626 = vmatprep.subr.mxu0 %v1939_v2  ;;  %240 = vmatprep.subr.mxu1 %v181_v29  ;;  %v182_v59 = vld [vmem:[%s3242_s5 + $0xb8] sm:$0xff]  ;;  %v179_v60 = vld [vmem:[%s3242_s5 + $0xa0] sm:$0xff]  ;;  %v176_v61 = vld [vmem:[%s3242_s5 + $0x88] sm:$0xff] }
  0x24   : > { %1627 = vmatpush3.msra.mxu0 %v79_v25  ;;  %241 = vmatpush1.msra.mxu1 %v180_v30  ;;  %v173_v62 = vld [vmem:[%s3242_s5 + $0x70] sm:$0xff]  ;;  %v170_v63 = vld [vmem:[%s3242_s5 + $0x58] sm:$0xff]  ;;  %v167_v1 = vld [vmem:[%s3242_s5 + $0x40] sm:$0xff] }
  0x25   : > { %1628 = vmatprep.subr.mxu0 %v1939_v2  ;;  %242 = vmatprep.subr.mxu1 %v178_v32  ;;  %v164_v3 = vld [vmem:[%s3242_s5 + $0x28] sm:$0xff]  ;;  %v161_v4 = vld [vmem:[%s3242_s5 + $0x10] sm:$0xff]  ;;  %v408_v8 = vld [vmem:[%s3243_s6 + $0x158] sm:$0xff] }
  0x26   : > { %1629 = vmatpush3.msra.mxu0 %v78_v28  ;;  %243 = vmatpush1.msra.mxu1 %v177_v33  ;;  %v411_v5 = vld [vmem:[%s3243_s6 + $0x170] sm:$0xff]  ;;  %v410_v6 = vld [vmem:[%s3243_s6 + $0x168] sm:$0xff]  ;;  %v412_v9 = vld [vmem:[%s3243_s6 + $0x178] sm:$0xff] }
  0x27   : > { %1630 = vmatprep.subr.mxu0 %v1939_v2  ;;  %244 = vmatprep.subr.mxu1 %v175_v35  ;;  %v407_v10 = vld [vmem:[%s3243_s6 + $0x150] sm:$0xff]  ;;  %v405_v12 = vld [vmem:[%s3243_s6 + $0x140] sm:$0xff]  ;;  %v404_v14 = vld [vmem:[%s3243_s6 + $0x138] sm:$0xff] }
  0x28   : > { %1631 = vmatpush3.msra.mxu0 %v77_v31  ;;  %245 = vmatpush1.msra.mxu1 %v174_v36  ;;  %v409_v13 = vld [vmem:[%s3243_s6 + $0x160] sm:$0xff]  ;;  %v402_v15 = vld [vmem:[%s3243_s6 + $0x128] sm:$0xff]  ;;  %v399_v18 = vld [vmem:[%s3243_s6 + $0x110] sm:$0xff] }
  0x29   : > { %1632 = vmatprep.subr.mxu0 %v1939_v2  ;;  %246 = vmatprep.subr.mxu1 %v172_v38  ;;  %v406_v16 = vld [vmem:[%s3243_s6 + $0x148] sm:$0xff]  ;;  %v401_v17 = vld [vmem:[%s3243_s6 + $0x120] sm:$0xff]  ;;  %v403_v19 = vld [vmem:[%s3243_s6 + $0x130] sm:$0xff] }
  0x2a   : > { %1633 = vmatpush3.msra.mxu0 %v76_v34  ;;  %247 = vmatpush1.msra.mxu1 %v171_v39  ;;  %v398_v20 = vld [vmem:[%s3243_s6 + $0x108] sm:$0xff]  ;;  %v396_v21 = vld [vmem:[%s3243_s6 + $0xf8] sm:$0xff]  ;;  %v395_v23 = vld [vmem:[%s3243_s6 + $0xf0] sm:$0xff] }
  0x2b   : > { %1634 = vmatprep.subr.mxu0 %v1939_v2  ;;  %248 = vmatprep.subr.mxu1 %v169_v41  ;;  %v400_v22 = vld [vmem:[%s3243_s6 + $0x118] sm:$0xff]  ;;  %v393_v24 = vld [vmem:[%s3243_s6 + $0xe0] sm:$0xff]  ;;  %v390_v27 = vld [vmem:[%s3243_s6 + $0xc8] sm:$0xff] }
  0x2c   : > { %1635 = vmatpush3.msra.mxu0 %v75_v37  ;;  %249 = vmatpush1.msra.mxu1 %v168_v42  ;;  %v397_v25 = vld [vmem:[%s3243_s6 + $0x100] sm:$0xff]  ;;  %v392_v26 = vld [vmem:[%s3243_s6 + $0xd8] sm:$0xff]  ;;  %v394_v28 = vld [vmem:[%s3243_s6 + $0xe8] sm:$0xff] }
  0x2d   : > { %1636 = vmatprep.subr.mxu0 %v1939_v2  ;;  %250 = vmatprep.subr.mxu1 %v166_v44  ;;  %v389_v29 = vld [vmem:[%s3243_s6 + $0xc0] sm:$0xff]  ;;  %v387_v30 = vld [vmem:[%s3243_s6 + $0xb0] sm:$0xff]  ;;  %v386_v32 = vld [vmem:[%s3243_s6 + $0xa8] sm:$0xff] }
  0x2e   : > { %1637 = vmatpush3.msra.mxu0 %v74_v40  ;;  %251 = vmatpush1.msra.mxu1 %v165_v47  ;;  %v391_v31 = vld [vmem:[%s3243_s6 + $0xd0] sm:$0xff]  ;;  %v384_v33 = vld [vmem:[%s3243_s6 + $0x98] sm:$0xff]  ;;  %v381_v36 = vld [vmem:[%s3243_s6 + $0x80] sm:$0xff] }
  0x2f   : > { %1638 = vmatprep.subr.mxu0 %v1939_v2  ;;  %252 = vmatprep.subr.mxu1 %v163_v48  ;;  %v388_v34 = vld [vmem:[%s3243_s6 + $0xb8] sm:$0xff]  ;;  %v383_v35 = vld [vmem:[%s3243_s6 + $0x90] sm:$0xff]  ;;  %v385_v37 = vld [vmem:[%s3243_s6 + $0xa0] sm:$0xff] }
  0x30   : > { %1639 = vmatpush3.msra.mxu0 %v73_v43  ;;  %253 = vmatpush1.msra.mxu1 %v162_v50  ;;  %v380_v38 = vld [vmem:[%s3243_s6 + $0x78] sm:$0xff]  ;;  %v378_v39 = vld [vmem:[%s3243_s6 + $0x68] sm:$0xff]  ;;  %v377_v41 = vld [vmem:[%s3243_s6 + $0x60] sm:$0xff] }
  0x31   : > { %1641 = vmatmul.mubr.f32.vlgmr.msra.gmra.mxu0 %v72_v45  ;;  %1643 = vmatprep.subr.mxu0 %v1939_v2  ;;  %v382_v40 = vld [vmem:[%s3243_s6 + $0x88] sm:$0xff]  ;;  %v375_v42 = vld [vmem:[%s3243_s6 + $0x50] sm:$0xff]  ;;  %v372_v45 = vld [vmem:[%s3243_s6 + $0x38] sm:$0xff] }
  0x32   : > { %1644 = vmatpush3.msra.mxu0 %v206_v46  ;;  %254 = vmatprep.subr.mxu1 %v160_v51  ;;  %v379_v43 = vld [vmem:[%s3243_s6 + $0x70] sm:$0xff]  ;;  %v374_v44 = vld [vmem:[%s3243_s6 + $0x48] sm:$0xff]  ;;  %v376_v46 = vld [vmem:[%s3243_s6 + $0x58] sm:$0xff] }
  0x33   : > { %1645 = vmatprep.subr.mxu0 %v1939_v2  ;;  %255 = vmatpush1.msra.mxu1 %v159_v53  ;;  %v371_v47 = vld [vmem:[%s3243_s6 + $0x30] sm:$0xff]  ;;  %v369_v48 = vld [vmem:[%s3243_s6 + $0x20] sm:$0xff]  ;;  %v368_v50 = vld [vmem:[%s3243_s6 + $0x18] sm:$0xff] }
  0x34   : > { %1646 = vmatpush3.msra.mxu0 %v203_v49  ;;  %1675 = vmatprep.mubr.msk.f32.mxu0 %vm1940_vm0, %v1939_v2  ;;  %v373_v49 = vld [vmem:[%s3243_s6 + $0x40] sm:$0xff]  ;;  %v366_v51 = vld [vmem:[%s3243_s6 + $0x8] sm:$0xff] }
  0x35   : > { %1647 = vmatprep.subr.mxu0 %v1939_v2  ;;  %430 = vmatprep.subr.mxu1 %v411_v5  ;;  %v365_v53 = vld [vmem:[%s3243_s6] sm:$0xff] }
  0x36   : > { %1648 = vmatpush3.msra.mxu0 %v200_v52  ;;  %v370_v52 = vld [vmem:[%s3243_s6 + $0x28] sm:$0xff] }
  0x37   : > { %1649 = vmatprep.subr.mxu0 %v1939_v2 }
  0x38   : > { %1650 = vmatpush3.msra.mxu0 %v197_v54  ;;  %v367_v54 = vld [vmem:[%s3243_s6 + $0x10] sm:$0xff] }
  0x39   : > { %1651 = vmatprep.subr.mxu0 %v1939_v2 }
  0x3a   : > { %1652 = vmatpush3.msra.mxu0 %v194_v55 }
  0x3b   : > { %1653 = vmatprep.subr.mxu0 %v1939_v2 }
  0x3c   : > { %1654 = vmatpush3.msra.mxu0 %v191_v56 }
  0x3d   : > { %1655 = vmatprep.subr.mxu0 %v1939_v2 }
  0x3e   : > { %1656 = vmatpush3.msra.mxu0 %v188_v57  ;;  %v209_v57 = vlaneseq }
  0x3f   : > { %1657 = vmatprep.subr.mxu0 %v1939_v2 }
  0x40   : > { %1658 = vmatpush3.msra.mxu0 %v185_v58  ;;  %v210_v58 = vshrl.u32 %v209_v57, 7 }
  0x41   : > { %1659 = vmatprep.subr.mxu0 %v1939_v2 }
  0x42   : > { %1660 = vmatpush3.msra.mxu0 %v182_v59  ;;  %v2435_v59 = vsub.s32 0, %v210_v58 }
  0x43   : > { %1661 = vmatprep.subr.mxu0 %v1939_v2 }
  0x44   : > { %1662 = vmatpush3.msra.mxu0 %v179_v60  ;;  %v207_v60 = vld [vmem:[%s3244_s7] sm:$0x7] }
  0x45   : > { %1663 = vmatprep.subr.mxu0 %v1939_v2 }
  0x46   : > { %1664 = vmatpush3.msra.mxu0 %v176_v61 }
  0x47   : > { %1665 = vmatprep.subr.mxu0 %v1939_v2 }
  0x48   : > { %1666 = vmatpush3.msra.mxu0 %v173_v62  ;;  %v413_v62 = vld [vmem:[%s3245_s8] sm:$0x7] }
  0x49   : > { %1667 = vmatprep.subr.mxu0 %v1939_v2 }
  0x4a   : > { %1668 = vmatpush3.msra.mxu0 %v170_v63  ;;  %v212_v63 = vrot.slane %v207_v60, %v2435_v59 }
  0x4b   : > { %1669 = vmatprep.subr.mxu0 %v1939_v2 }
  0x4c   : > { %1670 = vmatpush3.msra.mxu0 %v167_v1 }
  0x4d   : > { %1671 = vmatprep.subr.mxu0 %v1939_v2 }
  0x4e   : > { %1672 = vmatpush3.msra.mxu0 %v164_v3  ;;  %v2445_v3 = vsub.s32 1, %v210_v58 }
  0x4f   : > { %1673 = vmatprep.subr.mxu0 %v1939_v2 }
  0x50   : > { %1674 = vmatpush3.msra.mxu0 %v161_v4 }
  0x51   : > { %1678 = vmatprep.subr.mxu0 %v1939_v2 }
  0xf1   : > { %v155_v7 = vpop.f32.mrf.mxu0 }
  0xf2   : > { %289 = vmatmul.mubr.f32.vlgmr.msra.gmra.mxu1 %v155_v7  ;;  %1676 = vmatmul.mubr.f32.vlgmr.msra.gmra.mxu0 %v155_v7  ;;  %v422_v7 = vrot.slane %v413_v62, %v2445_v3 }
  0xf3   : > { %431 = vmatpush1.msra.mxu1 %v410_v6  ;;  %v1642_v11 = vpop.f32.mrf.mxu0  ;;  %494 = vmatprep.mubr.f32.mxu1 %v1939_v2 }
  0xf4   : > { %432 = vmatprep.subr.mxu1 %v408_v8  ;;  %1679 = vmatpush3.msra.mxu0 %v412_v9 }
  0xf5   : > { %433 = vmatpush1.msra.mxu1 %v407_v10  ;;  %1680 = vmatprep.subr.mxu0 %v1939_v2  ;;  %v216_v10 = vrot.slane %v207_v60, %v2445_v3 }
  0xf6   : > { %434 = vmatprep.subr.mxu1 %v405_v12  ;;  %1681 = vmatpush3.msra.mxu0 %v409_v13 }
  0xf7   : > { %435 = vmatpush1.msra.mxu1 %v404_v14  ;;  %1682 = vmatprep.subr.mxu0 %v1939_v2 }
  0xf8   : > { %436 = vmatprep.subr.mxu1 %v402_v15  ;;  %1683 = vmatpush3.msra.mxu0 %v406_v16 }
  0xf9   : > { %437 = vmatpush1.msra.mxu1 %v401_v17  ;;  %1684 = vmatprep.subr.mxu0 %v1939_v2 }
  0xfa   : > { %438 = vmatprep.subr.mxu1 %v399_v18  ;;  %1685 = vmatpush3.msra.mxu0 %v403_v19 }
  0xfb   : > { %439 = vmatpush1.msra.mxu1 %v398_v20  ;;  %1686 = vmatprep.subr.mxu0 %v1939_v2  ;;  %v2449_v20 = vsub.s32 2, %v210_v58 }
  0xfc   : > { %440 = vmatprep.subr.mxu1 %v396_v21  ;;  %1687 = vmatpush3.msra.mxu0 %v400_v22 }
  0xfd   : > { %441 = vmatpush1.msra.mxu1 %v395_v23  ;;  %1688 = vmatprep.subr.mxu0 %v1939_v2  ;;  %v426_v21 = vrot.slane %v413_v62, %v2449_v20  ;;  %v220_v23 = vrot.slane %v207_v60, %v2449_v20 }
  0xfe   : > { %442 = vmatprep.subr.mxu1 %v393_v24  ;;  %1689 = vmatpush3.msra.mxu0 %v397_v25 }
  0xff   : > { %443 = vmatpush1.msra.mxu1 %v392_v26  ;;  %1690 = vmatprep.subr.mxu0 %v1939_v2 }
 0x100   : > { %444 = vmatprep.subr.mxu1 %v390_v27  ;;  %1691 = vmatpush3.msra.mxu0 %v394_v28 }
 0x101   : > { %445 = vmatpush1.msra.mxu1 %v389_v29  ;;  %1692 = vmatprep.subr.mxu0 %v1939_v2 }
 0x102   : > { %446 = vmatprep.subr.mxu1 %v387_v30  ;;  %1693 = vmatpush3.msra.mxu0 %v391_v31 }
 0x103   : > { %447 = vmatpush1.msra.mxu1 %v386_v32  ;;  %1694 = vmatprep.subr.mxu0 %v1939_v2 }
 0x104   : > { %448 = vmatprep.subr.mxu1 %v384_v33  ;;  %1695 = vmatpush3.msra.mxu0 %v388_v34 }
 0x105   : > { %449 = vmatpush1.msra.mxu1 %v383_v35  ;;  %1696 = vmatprep.subr.mxu0 %v1939_v2 }
 0x106   : > { %450 = vmatprep.subr.mxu1 %v381_v36  ;;  %1697 = vmatpush3.msra.mxu0 %v385_v37  ;;  %v2462_v36 = vand.u32 (%p65_p5), 127, %v209_v57  ;;  %v604_v37 = vld [vmem:[%s3239_s2] sm:$0xff] (%p65_p5)  }
 0x107   : > { %451 = vmatpush1.msra.mxu1 %v380_v38  ;;  %1698 = vmatprep.subr.mxu0 %v1939_v2  ;;  %v1941_v38 = vmov (%p65_p5), 0.0  }
 0x108   : > { %452 = vmatprep.subr.mxu1 %v378_v39  ;;  %1699 = vmatpush3.msra.mxu0 %v382_v40  ;;  %592 = vst [vmem:[%s3252_s15] sm:$0xff] (%p65_p5), %v1941_v38  ;;  %593 = vst [vmem:[%s3252_s15 + $0x8] sm:$0xff] (%p65_p5), %v1941_v38  ;;  %vm603_vm1 = vcmp.lt.s32.totalorder (%p65_p5), %v2462_v36, 24 }
 0x109   : > { %453 = vmatpush1.msra.mxu1 %v377_v41  ;;  %1700 = vmatprep.subr.mxu0 %v1939_v2  ;;  %594 = vst [vmem:[%s3252_s15 + $0x10] sm:$0xff] (%p65_p5), %v1941_v38  ;;  %595 = vst [vmem:[%s3252_s15 + $0x18] sm:$0xff] (%p65_p5), %v1941_v38 }
 0x10a   : > { %454 = vmatprep.subr.mxu1 %v375_v42  ;;  %1701 = vmatpush3.msra.mxu0 %v379_v43  ;;  %596 = vst [vmem:[%s3252_s15 + $0x20] sm:$0xff] (%p65_p5), %v1941_v38  ;;  %597 = vst [vmem:[%s3252_s15 + $0x28] sm:$0xff] (%p65_p5), %v1941_v38 }
 0x10b   : > { %455 = vmatpush1.msra.mxu1 %v374_v44  ;;  %1702 = vmatprep.subr.mxu0 %v1939_v2  ;;  %598 = vst [vmem:[%s3252_s15 + $0x30] sm:$0xff] (%p65_p5), %v1941_v38  ;;  %599 = vst [vmem:[%s3252_s15 + $0x38] sm:$0xff] (%p65_p5), %v1941_v38 }
 0x10c   : > { %456 = vmatprep.subr.mxu1 %v372_v45  ;;  %1703 = vmatpush3.msra.mxu0 %v376_v46 }
 0x10d   : > { %457 = vmatpush1.msra.mxu1 %v371_v47  ;;  %1704 = vmatprep.subr.mxu0 %v1939_v2 }
 0x10e   : > { %458 = vmatprep.subr.mxu1 %v369_v48  ;;  %1705 = vmatpush3.msra.mxu0 %v373_v49 }
 0x10f   : > { %459 = vmatpush1.msra.mxu1 %v368_v50  ;;  %1706 = vmatprep.subr.mxu0 %v1939_v2 }
 0x110   : > { %460 = vmatprep.subr.mxu1 %v366_v51  ;;  %1707 = vmatpush3.msra.mxu0 %v370_v52 }
 0x111   : > { %461 = vmatpush1.msra.mxu1 %v365_v53  ;;  %1708 = vmatprep.subr.mxu0 %v1939_v2 }
 0x112   : > { %495 = vmatmul.mubr.f32.vlgmr.msra.gmra.mxu1 %v1920_v0  ;;  %1709 = vmatpush3.msra.mxu0 %v367_v54 }
 0x113   : > { %1710 = vmatprep.mubr.msk.f32.mxu0 %vm1940_vm0, %v1939_v2  ;;  %v418_v2 = vrot.slane %v413_v62, %v2435_v59 }
 0x114   : > { %1711 = vmatmul.mubr.f32.vlgmr.msra.gmra.mxu0 %v1920_v0 }
 0x1b2   : > { %v361_v55 = vpop.f32.mrf.mxu0  ;;  %v290_v61 = vpop.f32.mrf.mxu1 }
 0x1b3   : > { %v291_v5 = vadd.f32 %v290_v61, %v212_v63  ;;  %v362_v27 = vadd.f32 %v361_v55, %v220_v23 }
 0x1b4   : > { %v1677_v56 = vpop.f32.mrf.mxu0  ;;  %v292_v1 = vpop.f32.mrf.mxu1 }
 0x1b5   : > { %v293_v15 = vadd.f32 %v292_v1, %v216_v10 }
 0x1d2   : > { %v496_v4 = vpop.f32.mrf.mxu1 }
 0x1d3   : > { %v497_v6 = vadd.f32 %v496_v4, %v418_v2 }
 0x1d4   : > { %v498_v8 = vpop.f32.mrf.mxu1  ;;  %v567_v9 = vpop.f32.mrf.mxu0 }
 0x1d5   : > { %v571_v11 = vadd.f32 %v497_v6, %v291_v5  ;;  %v499_v14 = vadd.f32 %v498_v8, %v422_v7  ;;  %v568_v25 = vadd.f32 %v567_v9, %v426_v21 }
 0x1d6   : > { %v1712_v12 = vpop.f32.mrf.mxu0 }
 0x1d7   : > { %v1429_v13 = vmul.f32 -1.442695, %v571_v11  ;;  %v578_v16 = vadd.f32 %v499_v14, %v293_v15 }
 0x1d9   : > { %1864 = vpow2.f32 %v1429_v13  ;;  %v1430_v17 = vmul.f32 -1.442695, %v578_v16 }
 0x1db   : > { %1866 = vpow2.f32 %v1430_v17 }
 0x1e6   : > { %v1865_v18 = vpop.eup %1864 }
 0x1e7   : > { %v575_v19 = vadd.f32 1.0, %v1865_v18 }
 0x1e8   : > { %v1867_v22 = vpop.eup %1866 }
 0x1e9   : > { %1868 = vrcp.f32 %v575_v19  ;;  %v582_v24 = vadd.f32 1.0, %v1867_v22 }
 0x1eb   : > { %1870 = vrcp.f32 %v582_v24 }
 0x1f6   : > { %v1869_v26 = vpop.eup %1868 }
 0x1f7   : > { %v585_v28 = vmul.f32 %v1869_v26, %v568_v25 }
 0x1f8   : > { %v1871_v30 = vpop.eup %1870 }
 0x1f9   : > { %v586_v29 = vadd.f32 %v585_v28, %v362_v27  ;;  %v588_v31 = vsub.f32 1.0, %v1871_v30  ;;  %v590_v33 = vmul.f32 %v1920_v0, %v1871_v30 }
 0x1fb   : > { %1872 = vtanh.f32 %v586_v29 }
 0x208   : > { %v1873_v32 = vpop.eup %1872 }
 0x209   : > { %v589_v34 = vmul.f32 %v1873_v32, %v588_v31 }
 0x20a   :  { %67 = sbr.rel (!%p65_p5) target bundleno = 16 (0x10), region = 101 }
 0x20b   : > { %v2454_v0 = vadd.f32 %v590_v33, %v589_v34  }
 0x20d   : > { %v3253_v35 = vmov %v2454_v0 }
 0x20e   : > { %v3254_v0 = vmov %v3253_v35  ;;  %v3255_v39 = vmov (%p65_p5), %v3253_v35 }
 0x20f   :  { %v602_v0 = vcvt.s32.f32 %v2462_v36 }
 0x210 LB: > { %v628_v40 = vld [vmem:[%s3241_s4 + $0x78] sm:$0xff]  ;;  %876 = vmatprep.mubr.f32.mxu1 %v3253_v35  ;;  %v1942_v41 = vmov 0.0   ;;  %v627_v42 = vld [vmem:[%s3241_s4 + $0x70] sm:$0xff]  ;;  %vm1943_vm2 = vmmov 0   ;;  %v626_v43 = vld [vmem:[%s3241_s4 + $0x68] sm:$0xff]  ;;  %s1434_s29 = sshll.u32 %s1936_s26, 3  ;;  %s1936_s26 = sphi %s2498_s26, %s610_s26   ;;  %v1932_v39 = vphi %v3255_v39, %v1179_v39   ;;  %v1928_v37 = vphi %v604_v37, %v1397_v37  }
 0x211   : > { %1713 = vmatprep.subr.mxu0 %v1942_v41  ;;  %1745 = vmatprep.mubr.msk.f32.mxu0 %vm1943_vm2, %v1942_v41  ;;  %v625_v44 = vld [vmem:[%s3241_s4 + $0x60] sm:$0xff]  ;;  %v745_v45 = vld [vmem:[%s3246_s9 + $0x170] sm:$0xff]  ;;  %v744_v46 = vld [vmem:[%s3246_s9 + $0x168] sm:$0xff]  ;;  %s1376_s18 = scalar_lea.vmem %s3252_s15, %s1434_s29  ;;  %s1388_s19 = sld [smem:[#allocation2 + %s1936_s26]] }
 0x212   : > { %1714 = vmatpush3.msra.mxu0 %v628_v40  ;;  %812 = vmatprep.subr.mxu1 %v745_v45  ;;  %v742_v47 = vld [vmem:[%s3246_s9 + $0x158] sm:$0xff]  ;;  %v741_v48 = vld [vmem:[%s3246_s9 + $0x150] sm:$0xff]  ;;  %v739_v50 = vld [vmem:[%s3246_s9 + $0x140] sm:$0xff]  ;;  %s1390_s22 = scalar_lea.vmem %s3239_s2, %s1434_s29  ;;  %s610_s26 = sadd.s32 1, %s1936_s26  }
 0x213   : > { %1715 = vmatprep.subr.mxu0 %v1942_v41  ;;  %v624_v49 = vld [vmem:[%s3241_s4 + $0x58] sm:$0xff]  ;;  %813 = vmatpush1.msra.mxu1 %v744_v46  ;;  %v623_v52 = vld [vmem:[%s3241_s4 + $0x50] sm:$0xff]  ;;  %v736_v53 = vld [vmem:[%s3246_s9 + $0x128] sm:$0xff]  ;;  %p607_p6 = scmp.ge.s32.totalorder %s610_s26, 8  }
 0x214   : > { %1716 = vmatpush3.msra.mxu0 %v627_v42  ;;  %814 = vmatprep.subr.mxu1 %v742_v47  ;;  %v738_v51 = vld [vmem:[%s3246_s9 + $0x138] sm:$0xff]  ;;  %v735_v54 = vld [vmem:[%s3246_s9 + $0x120] sm:$0xff]  ;;  %v622_v55 = vld [vmem:[%s3241_s4 + $0x48] sm:$0xff] }
 0x215   : > { %1717 = vmatprep.subr.mxu0 %v1942_v41  ;;  %815 = vmatpush1.msra.mxu1 %v741_v48  ;;  %v733_v56 = vld [vmem:[%s3246_s9 + $0x110] sm:$0xff]  ;;  %v732_v57 = vld [vmem:[%s3246_s9 + $0x108] sm:$0xff]  ;;  %v621_v58 = vld [vmem:[%s3241_s4 + $0x40] sm:$0xff] }
 0x216   : > { %1718 = vmatpush3.msra.mxu0 %v626_v43  ;;  %816 = vmatprep.subr.mxu1 %v739_v50  ;;  %v730_v60 = vld [vmem:[%s3246_s9 + $0xf8] sm:$0xff]  ;;  %v729_v61 = vld [vmem:[%s3246_s9 + $0xf0] sm:$0xff]  ;;  %v727_v63 = vld [vmem:[%s3246_s9 + $0xe0] sm:$0xff] }
 0x217   : > { %1719 = vmatprep.subr.mxu0 %v1942_v41  ;;  %817 = vmatpush1.msra.mxu1 %v738_v51  ;;  %v620_v62 = vld [vmem:[%s3241_s4 + $0x38] sm:$0xff]  ;;  %v619_v1 = vld [vmem:[%s3241_s4 + $0x30] sm:$0xff]  ;;  %v724_v4 = vld [vmem:[%s3246_s9 + $0xc8] sm:$0xff]  ;;  %s1389_s16 = scvt.s32.f32 %s1388_s19 }
 0x218   : > { %1720 = vmatpush3.msra.mxu0 %v625_v44  ;;  %818 = vmatprep.subr.mxu1 %v736_v53  ;;  %v726_v2 = vld [vmem:[%s3246_s9 + $0xd8] sm:$0xff]  ;;  %v723_v5 = vld [vmem:[%s3246_s9 + $0xc0] sm:$0xff]  ;;  %v618_v6 = vld [vmem:[%s3241_s4 + $0x28] sm:$0xff] }
 0x219   : > { %1721 = vmatprep.subr.mxu0 %v1942_v41  ;;  %819 = vmatpush1.msra.mxu1 %v735_v54  ;;  %v721_v7 = vld [vmem:[%s3246_s9 + $0xb0] sm:$0xff]  ;;  %v720_v8 = vld [vmem:[%s3246_s9 + $0xa8] sm:$0xff]  ;;  %v617_v9 = vld [vmem:[%s3241_s4 + $0x20] sm:$0xff]  ;;  %s1394_s23 = ssub.f32 1.0, %s1389_s16 }
 0x21a   : > { %1722 = vmatpush3.msra.mxu0 %v624_v49  ;;  %820 = vmatprep.subr.mxu1 %v733_v56  ;;  %v718_v10 = vld [vmem:[%s3246_s9 + $0x98] sm:$0xff]  ;;  %v717_v11 = vld [vmem:[%s3246_s9 + $0x90] sm:$0xff]  ;;  %v715_v13 = vld [vmem:[%s3246_s9 + $0x80] sm:$0xff] }
 0x21b   : > { %1723 = vmatprep.subr.mxu0 %v1942_v41  ;;  %821 = vmatpush1.msra.mxu1 %v732_v57  ;;  %v616_v12 = vld [vmem:[%s3241_s4 + $0x18] sm:$0xff]  ;;  %v615_v15 = vld [vmem:[%s3241_s4 + $0x10] sm:$0xff]  ;;  %v712_v16 = vld [vmem:[%s3246_s9 + $0x68] sm:$0xff] }
 0x21c   : > { %1724 = vmatpush3.msra.mxu0 %v623_v52  ;;  %822 = vmatprep.subr.mxu1 %v730_v60  ;;  %v714_v14 = vld [vmem:[%s3246_s9 + $0x78] sm:$0xff]  ;;  %v711_v17 = vld [vmem:[%s3246_s9 + $0x60] sm:$0xff]  ;;  %v614_v18 = vld [vmem:[%s3241_s4 + $0x8] sm:$0xff] }
 0x21d   : > { %1725 = vmatprep.subr.mxu0 %v1942_v41  ;;  %823 = vmatpush1.msra.mxu1 %v729_v61  ;;  %v709_v19 = vld [vmem:[%s3246_s9 + $0x50] sm:$0xff]  ;;  %v708_v21 = vld [vmem:[%s3246_s9 + $0x48] sm:$0xff]  ;;  %v613_v22 = vld [vmem:[%s3241_s4] sm:$0xff] }
 0x21e   : > { %1726 = vmatpush3.msra.mxu0 %v622_v55  ;;  %824 = vmatprep.subr.mxu1 %v727_v63  ;;  %v706_v23 = vld [vmem:[%s3246_s9 + $0x38] sm:$0xff]  ;;  %v705_v24 = vld [vmem:[%s3246_s9 + $0x30] sm:$0xff]  ;;  %v703_v25 = vld [vmem:[%s3246_s9 + $0x20] sm:$0xff] }
 0x21f   : > { %1727 = vmatprep.subr.mxu0 %v1942_v41  ;;  %825 = vmatpush1.msra.mxu1 %v726_v2  ;;  %v794_v26 = vld [vmem:[%s3246_s9 + $0x2f8] sm:$0xff]  ;;  %v700_v29 = vld [vmem:[%s3246_s9 + $0x8] sm:$0xff]  ;;  %v791_v30 = vld [vmem:[%s3246_s9 + $0x2e0] sm:$0xff] }
 0x220   : > { %1728 = vmatpush3.msra.mxu0 %v621_v58  ;;  %826 = vmatprep.subr.mxu1 %v724_v4  ;;  %v702_v27 = vld [vmem:[%s3246_s9 + $0x18] sm:$0xff]  ;;  %v699_v31 = vld [vmem:[%s3246_s9] sm:$0xff]  ;;  %v793_v33 = vld [vmem:[%s3246_s9 + $0x2f0] sm:$0xff] }
 0x221   : > { %1729 = vmatprep.subr.mxu0 %v1942_v41  ;;  %827 = vmatpush1.msra.mxu1 %v723_v5  ;;  %v746_v28 = vld [vmem:[%s3246_s9 + $0x178] sm:$0xff]  ;;  %v743_v32 = vld [vmem:[%s3246_s9 + $0x160] sm:$0xff]  ;;  %v788_v34 = vld [vmem:[%s3246_s9 + $0x2c8] sm:$0xff] }
 0x222   : > { %1730 = vmatpush3.msra.mxu0 %v620_v62  ;;  %828 = vmatprep.subr.mxu1 %v721_v7  ;;  %v740_v38 = vld [vmem:[%s3246_s9 + $0x148] sm:$0xff]  ;;  %v790_v40 = vld [vmem:[%s3246_s9 + $0x2d8] sm:$0xff]  ;;  %v785_v42 = vld [vmem:[%s3246_s9 + $0x2b0] sm:$0xff] }
 0x223   : > { %1731 = vmatprep.subr.mxu0 %v1942_v41  ;;  %829 = vmatpush1.msra.mxu1 %v720_v8  ;;  %v789_v43 = vld [vmem:[%s3246_s9 + $0x2d0] sm:$0xff]  ;;  %v787_v45 = vld [vmem:[%s3246_s9 + $0x2c0] sm:$0xff]  ;;  %v782_v46 = vld [vmem:[%s3246_s9 + $0x298] sm:$0xff] }
 0x224   : > { %1732 = vmatpush3.msra.mxu0 %v619_v1  ;;  %830 = vmatprep.subr.mxu1 %v718_v10  ;;  %v737_v44 = vld [vmem:[%s3246_s9 + $0x130] sm:$0xff]  ;;  %v786_v47 = vld [vmem:[%s3246_s9 + $0x2b8] sm:$0xff]  ;;  %v784_v49 = vld [vmem:[%s3246_s9 + $0x2a8] sm:$0xff] }
 0x225   : > { %1733 = vmatprep.subr.mxu0 %v1942_v41  ;;  %831 = vmatpush1.msra.mxu1 %v717_v11  ;;  %v734_v48 = vld [vmem:[%s3246_s9 + $0x118] sm:$0xff]  ;;  %v779_v50 = vld [vmem:[%s3246_s9 + $0x280] sm:$0xff]  ;;  %v781_v53 = vld [vmem:[%s3246_s9 + $0x290] sm:$0xff] }
 0x226   : > { %1734 = vmatpush3.msra.mxu0 %v618_v6  ;;  %832 = vmatprep.subr.mxu1 %v715_v13  ;;  %v783_v51 = vld [vmem:[%s3246_s9 + $0x2a0] sm:$0xff]  ;;  %v776_v54 = vld [vmem:[%s3246_s9 + $0x268] sm:$0xff]  ;;  %v778_v57 = vld [vmem:[%s3246_s9 + $0x278] sm:$0xff] }
 0x227   : > { %1735 = vmatprep.subr.mxu0 %v1942_v41  ;;  %833 = vmatpush1.msra.mxu1 %v714_v14  ;;  %v731_v52 = vld [vmem:[%s3246_s9 + $0x100] sm:$0xff]  ;;  %v780_v55 = vld [vmem:[%s3246_s9 + $0x288] sm:$0xff]  ;;  %v773_v58 = vld [vmem:[%s3246_s9 + $0x250] sm:$0xff] }
 0x228   : > { %1736 = vmatpush3.msra.mxu0 %v617_v9  ;;  %834 = vmatprep.subr.mxu1 %v712_v16  ;;  %v728_v56 = vld [vmem:[%s3246_s9 + $0xe8] sm:$0xff]  ;;  %v777_v60 = vld [vmem:[%s3246_s9 + $0x270] sm:$0xff]  ;;  %v775_v62 = vld [vmem:[%s3246_s9 + $0x260] sm:$0xff] }
 0x229   : > { %1737 = vmatprep.subr.mxu0 %v1942_v41  ;;  %835 = vmatpush1.msra.mxu1 %v711_v17  ;;  %v725_v61 = vld [vmem:[%s3246_s9 + $0xd0] sm:$0xff]  ;;  %v770_v63 = vld [vmem:[%s3246_s9 + $0x238] sm:$0xff]  ;;  %v772_v4 = vld [vmem:[%s3246_s9 + $0x248] sm:$0xff] }
 0x22a   : > { %1738 = vmatpush3.msra.mxu0 %v616_v12  ;;  %836 = vmatprep.subr.mxu1 %v709_v19  ;;  %v774_v2 = vld [vmem:[%s3246_s9 + $0x258] sm:$0xff]  ;;  %v767_v5 = vld [vmem:[%s3246_s9 + $0x220] sm:$0xff]  ;;  %v769_v8 = vld [vmem:[%s3246_s9 + $0x230] sm:$0xff] }
 0x22b   : > { %1739 = vmatprep.subr.mxu0 %v1942_v41  ;;  %837 = vmatpush1.msra.mxu1 %v708_v21  ;;  %v722_v1 = vld [vmem:[%s3246_s9 + $0xb8] sm:$0xff]  ;;  %v771_v6 = vld [vmem:[%s3246_s9 + $0x240] sm:$0xff]  ;;  %v764_v9 = vld [vmem:[%s3246_s9 + $0x208] sm:$0xff] }
 0x22c   : > { %1740 = vmatpush3.msra.mxu0 %v615_v15  ;;  %838 = vmatprep.subr.mxu1 %v706_v23  ;;  %v719_v7 = vld [vmem:[%s3246_s9 + $0xa0] sm:$0xff]  ;;  %v768_v10 = vld [vmem:[%s3246_s9 + $0x228] sm:$0xff]  ;;  %v766_v12 = vld [vmem:[%s3246_s9 + $0x218] sm:$0xff] }
 0x22d   : > { %1741 = vmatprep.subr.mxu0 %v1942_v41  ;;  %839 = vmatpush1.msra.mxu1 %v705_v24  ;;  %v716_v11 = vld [vmem:[%s3246_s9 + $0x88] sm:$0xff]  ;;  %v761_v13 = vld [vmem:[%s3246_s9 + $0x1f0] sm:$0xff]  ;;  %v763_v16 = vld [vmem:[%s3246_s9 + $0x200] sm:$0xff] }
 0x22e   : > { %1742 = vmatpush3.msra.mxu0 %v614_v18  ;;  %840 = vmatprep.subr.mxu1 %v703_v25  ;;  %v765_v14 = vld [vmem:[%s3246_s9 + $0x210] sm:$0xff]  ;;  %v758_v17 = vld [vmem:[%s3246_s9 + $0x1d8] sm:$0xff]  ;;  %v760_v21 = vld [vmem:[%s3246_s9 + $0x1e8] sm:$0xff] }
 0x22f   : > { %1743 = vmatprep.subr.mxu0 %v1942_v41  ;;  %841 = vmatpush1.msra.mxu1 %v702_v27  ;;  %v713_v15 = vld [vmem:[%s3246_s9 + $0x70] sm:$0xff]  ;;  %v762_v18 = vld [vmem:[%s3246_s9 + $0x1f8] sm:$0xff]  ;;  %v759_v23 = vld [vmem:[%s3246_s9 + $0x1e0] sm:$0xff] }
 0x230   : > { %1744 = vmatpush3.msra.mxu0 %v613_v22  ;;  %842 = vmatprep.subr.mxu1 %v700_v29  ;;  %v710_v19 = vld [vmem:[%s3246_s9 + $0x58] sm:$0xff]  ;;  %v755_v22 = vld [vmem:[%s3246_s9 + $0x1c0] sm:$0xff]  ;;  %v757_v25 = vld [vmem:[%s3246_s9 + $0x1d0] sm:$0xff] }
 0x231   : > { %1746 = vmatmul.mubr.f32.vlgmr.msra.gmra.mxu0 %v1928_v37  ;;  %1504 = vmatprep.subr.mxu0 %v794_v26  ;;  %v792_v37 = vld [vmem:[%s3246_s9 + $0x2e8] sm:$0xff]  ;;  %v707_v24 = vld [vmem:[%s3246_s9 + $0x40] sm:$0xff]  ;;  %v754_v29 = vld [vmem:[%s3246_s9 + $0x1b8] sm:$0xff] }
 0x232   : > { %1505 = vmatpush3.msra.mxu0 %v746_v28  ;;  %843 = vmatpush1.msra.mxu1 %v699_v31  ;;  %v752_v26 = vld [vmem:[%s3246_s9 + $0x1a8] sm:$0xff]  ;;  %v753_v31 = vld [vmem:[%s3246_s9 + $0x1b0] sm:$0xff] }
 0x233   : > { %1506 = vmatprep.subr.mxu0 %v791_v30  ;;  %844 = vmatprep.subr.mxu1 %v793_v33  ;;  %v756_v27 = vld [vmem:[%s3246_s9 + $0x1c8] sm:$0xff]  ;;  %v749_v30 = vld [vmem:[%s3246_s9 + $0x190] sm:$0xff]  ;;  %v751_v33 = vld [vmem:[%s3246_s9 + $0x1a0] sm:$0xff] }
 0x234   : > { %1507 = vmatpush3.msra.mxu0 %v743_v32  ;;  %845 = vmatpush2.msra.mxu1 %v792_v37  ;;  %v704_v28 = vld [vmem:[%s3246_s9 + $0x28] sm:$0xff]  ;;  %v701_v32 = vld [vmem:[%s3246_s9 + $0x10] sm:$0xff] }
 0x235   : > { %1508 = vmatprep.subr.mxu0 %v788_v34  ;;  %846 = vmatprep.subr.mxu1 %v790_v40  ;;  %v750_v34 = vld [vmem:[%s3246_s9 + $0x198] sm:$0xff]  ;;  %v748_v37 = vld [vmem:[%s3246_s9 + $0x188] sm:$0xff]  ;;  %v999_v40 = vld [vmem:[%s3247_s10 + $0x170] sm:$0xff] }
 0x236   : > { %1509 = vmatpush3.msra.mxu0 %v740_v38  ;;  %847 = vmatpush2.msra.mxu1 %v789_v43  ;;  %v747_v38 = vld [vmem:[%s3246_s9 + $0x180] sm:$0xff] }
 0x237   : > { %1510 = vmatprep.subr.mxu0 %v785_v42  ;;  %848 = vmatprep.subr.mxu1 %v787_v45  ;;  %v998_v42 = vld [vmem:[%s3247_s10 + $0x168] sm:$0xff]  ;;  %v1000_v45 = vld [vmem:[%s3247_s10 + $0x178] sm:$0xff] }
 0x238   : > { %1511 = vmatpush3.msra.mxu0 %v737_v44  ;;  %849 = vmatpush2.msra.mxu1 %v786_v47  ;;  %v996_v44 = vld [vmem:[%s3247_s10 + $0x158] sm:$0xff] }
 0x239   : > { %1512 = vmatprep.subr.mxu0 %v782_v46  ;;  %850 = vmatprep.subr.mxu1 %v784_v49  ;;  %v995_v46 = vld [vmem:[%s3247_s10 + $0x150] sm:$0xff]  ;;  %v997_v49 = vld [vmem:[%s3247_s10 + $0x160] sm:$0xff] }
 0x23a   : > { %1513 = vmatpush3.msra.mxu0 %v734_v48  ;;  %851 = vmatpush2.msra.mxu1 %v783_v51  ;;  %v993_v48 = vld [vmem:[%s3247_s10 + $0x140] sm:$0xff]  ;;  %v990_v51 = vld [vmem:[%s3247_s10 + $0x128] sm:$0xff] }
 0x23b   : > { %1514 = vmatprep.subr.mxu0 %v779_v50  ;;  %852 = vmatprep.subr.mxu1 %v781_v53  ;;  %v992_v50 = vld [vmem:[%s3247_s10 + $0x138] sm:$0xff]  ;;  %v989_v53 = vld [vmem:[%s3247_s10 + $0x120] sm:$0xff] }
 0x23c   : > { %1515 = vmatpush3.msra.mxu0 %v731_v52  ;;  %853 = vmatpush2.msra.mxu1 %v780_v55  ;;  %v994_v52 = vld [vmem:[%s3247_s10 + $0x148] sm:$0xff]  ;;  %v991_v55 = vld [vmem:[%s3247_s10 + $0x130] sm:$0xff] }
 0x23d   : > { %1516 = vmatprep.subr.mxu0 %v776_v54  ;;  %854 = vmatprep.subr.mxu1 %v778_v57  ;;  %v987_v54 = vld [vmem:[%s3247_s10 + $0x110] sm:$0xff]  ;;  %v984_v57 = vld [vmem:[%s3247_s10 + $0xf8] sm:$0xff] }
 0x23e   : > { %1517 = vmatpush3.msra.mxu0 %v728_v56  ;;  %855 = vmatpush2.msra.mxu1 %v777_v60  ;;  %v986_v56 = vld [vmem:[%s3247_s10 + $0x108] sm:$0xff]  ;;  %v983_v60 = vld [vmem:[%s3247_s10 + $0xf0] sm:$0xff] }
 0x23f   : > { %1518 = vmatprep.subr.mxu0 %v773_v58  ;;  %856 = vmatprep.subr.mxu1 %v775_v62  ;;  %v988_v58 = vld [vmem:[%s3247_s10 + $0x118] sm:$0xff]  ;;  %v985_v62 = vld [vmem:[%s3247_s10 + $0x100] sm:$0xff] }
 0x240   : > { %1519 = vmatpush3.msra.mxu0 %v725_v61  ;;  %857 = vmatpush2.msra.mxu1 %v774_v2  ;;  %v981_v61 = vld [vmem:[%s3247_s10 + $0xe0] sm:$0xff]  ;;  %v978_v2 = vld [vmem:[%s3247_s10 + $0xc8] sm:$0xff] }
 0x241   : > { %1520 = vmatprep.subr.mxu0 %v770_v63  ;;  %858 = vmatprep.subr.mxu1 %v772_v4  ;;  %v980_v63 = vld [vmem:[%s3247_s10 + $0xd8] sm:$0xff]  ;;  %v977_v4 = vld [vmem:[%s3247_s10 + $0xc0] sm:$0xff] }
 0x242   : > { %1521 = vmatpush3.msra.mxu0 %v722_v1  ;;  %859 = vmatpush2.msra.mxu1 %v771_v6  ;;  %v982_v1 = vld [vmem:[%s3247_s10 + $0xe8] sm:$0xff]  ;;  %v979_v6 = vld [vmem:[%s3247_s10 + $0xd0] sm:$0xff] }
 0x243   : > { %1522 = vmatprep.subr.mxu0 %v767_v5  ;;  %860 = vmatprep.subr.mxu1 %v769_v8  ;;  %v975_v5 = vld [vmem:[%s3247_s10 + $0xb0] sm:$0xff]  ;;  %v972_v8 = vld [vmem:[%s3247_s10 + $0x98] sm:$0xff] }
 0x244   : > { %1523 = vmatpush3.msra.mxu0 %v719_v7  ;;  %861 = vmatpush2.msra.mxu1 %v768_v10  ;;  %v974_v7 = vld [vmem:[%s3247_s10 + $0xa8] sm:$0xff]  ;;  %v971_v10 = vld [vmem:[%s3247_s10 + $0x90] sm:$0xff] }
 0x245   : > { %1524 = vmatprep.subr.mxu0 %v764_v9  ;;  %862 = vmatprep.subr.mxu1 %v766_v12  ;;  %v976_v9 = vld [vmem:[%s3247_s10 + $0xb8] sm:$0xff]  ;;  %v973_v12 = vld [vmem:[%s3247_s10 + $0xa0] sm:$0xff] }
 0x246   : > { %1525 = vmatpush3.msra.mxu0 %v716_v11  ;;  %863 = vmatpush2.msra.mxu1 %v765_v14  ;;  %v969_v11 = vld [vmem:[%s3247_s10 + $0x80] sm:$0xff]  ;;  %v966_v14 = vld [vmem:[%s3247_s10 + $0x68] sm:$0xff] }
 0x247   : > { %1526 = vmatprep.subr.mxu0 %v761_v13  ;;  %864 = vmatprep.subr.mxu1 %v763_v16  ;;  %v968_v13 = vld [vmem:[%s3247_s10 + $0x78] sm:$0xff]  ;;  %v965_v16 = vld [vmem:[%s3247_s10 + $0x60] sm:$0xff] }
 0x248   : > { %1527 = vmatpush3.msra.mxu0 %v713_v15  ;;  %865 = vmatpush2.msra.mxu1 %v762_v18  ;;  %v970_v15 = vld [vmem:[%s3247_s10 + $0x88] sm:$0xff]  ;;  %v967_v18 = vld [vmem:[%s3247_s10 + $0x70] sm:$0xff] }
 0x249   : > { %1528 = vmatprep.subr.mxu0 %v758_v17  ;;  %866 = vmatprep.subr.mxu1 %v760_v21  ;;  %v963_v17 = vld [vmem:[%s3247_s10 + $0x50] sm:$0xff]  ;;  %v960_v21 = vld [vmem:[%s3247_s10 + $0x38] sm:$0xff] }
 0x24a   : > { %1529 = vmatpush3.msra.mxu0 %v710_v19  ;;  %867 = vmatpush2.msra.mxu1 %v759_v23  ;;  %v962_v19 = vld [vmem:[%s3247_s10 + $0x48] sm:$0xff]  ;;  %v959_v23 = vld [vmem:[%s3247_s10 + $0x30] sm:$0xff] }
 0x24b   : > { %1530 = vmatprep.subr.mxu0 %v755_v22  ;;  %868 = vmatprep.subr.mxu1 %v757_v25  ;;  %v964_v22 = vld [vmem:[%s3247_s10 + $0x58] sm:$0xff]  ;;  %v961_v25 = vld [vmem:[%s3247_s10 + $0x40] sm:$0xff] }
 0x24c   : > { %1531 = vmatpush3.msra.mxu0 %v707_v24  ;;  %869 = vmatpush2.msra.mxu1 %v756_v27  ;;  %v957_v24 = vld [vmem:[%s3247_s10 + $0x20] sm:$0xff]  ;;  %v954_v27 = vld [vmem:[%s3247_s10 + $0x8] sm:$0xff] }
 0x24d   : > { %1532 = vmatprep.subr.mxu0 %v752_v26  ;;  %870 = vmatprep.subr.mxu1 %v754_v29  ;;  %v956_v26 = vld [vmem:[%s3247_s10 + $0x18] sm:$0xff]  ;;  %v953_v29 = vld [vmem:[%s3247_s10] sm:$0xff] }
 0x24e   : > { %1533 = vmatpush3.msra.mxu0 %v704_v28  ;;  %871 = vmatpush2.msra.mxu1 %v753_v31  ;;  %v958_v28 = vld [vmem:[%s3247_s10 + $0x28] sm:$0xff]  ;;  %v1211_v31 = vld [vmem:[%s3250_s13 + $0xf8] sm:$0xff] }
 0x24f   : > { %1534 = vmatprep.subr.mxu0 %v749_v30  ;;  %872 = vmatprep.subr.mxu1 %v751_v33  ;;  %v955_v30 = vld [vmem:[%s3247_s10 + $0x10] sm:$0xff] }
 0x250   : > { %1535 = vmatpush3.msra.mxu0 %v701_v32  ;;  %947 = vmatprep.mubr.f32.mxu0 %v3253_v35  ;;  %v1195_v32 = vld [vmem:[%s3250_s13 + $0x78] sm:$0xff]  ;;  %v1210_v33 = vld [vmem:[%s3250_s13 + $0xf0] sm:$0xff] }
 0x251   : > { %873 = vmatpush2.msra.mxu1 %v750_v34  ;;  %1018 = vmatprep.subr.mxu0 %v999_v40  ;;  %v1194_v34 = vld [vmem:[%s3250_s13 + $0x70] sm:$0xff]  ;;  %v1227_v40 = vld [vmem:[%s3250_s13 + $0x178] sm:$0xff] }
 0x252   : > { %874 = vmatprep.subr.mxu1 %v748_v37  ;;  %v1209_v37 = vld [vmem:[%s3250_s13 + $0xe8] sm:$0xff] }
 0x253   : > { %875 = vmatpush2.msra.mxu1 %v747_v38  ;;  %v1193_v38 = vld [vmem:[%s3250_s13 + $0x68] sm:$0xff] }
 0x254   : > { %1748 = vmatprep.subr.mxu1 %v1942_v41 }
 0x2f1   : > { %v2873_v43 = vpop.f32.mrf.mxu0 }
 0x2f2   : > { %877 = vmatmul.mubr.f32.vlgmr.msra.gmra.mxu1 %v2873_v43  ;;  %948 = vmatmul.mubr.f32.vlgmr.msra.gmra.mxu0 %v2873_v43 }
 0x2f3   : > { %1019 = vmatpush1.msra.mxu0 %v998_v42  ;;  %v1747_v47 = vpop.f32.mrf.mxu0  ;;  %1082 = vmatprep.mubr.f32.mxu0 %v1942_v41  ;;  %v1208_v42 = vld [vmem:[%s3250_s13 + $0xe0] sm:$0xff] }
 0x2f4   : > { %1020 = vmatprep.subr.mxu0 %v996_v44  ;;  %1749 = vmatpush3.msra.mxu1 %v1000_v45  ;;  %v1192_v44 = vld [vmem:[%s3250_s13 + $0x60] sm:$0xff]  ;;  %v1226_v45 = vld [vmem:[%s3250_s13 + $0x170] sm:$0xff]  ;;  %v1191_v47 = vld [vmem:[%s3250_s13 + $0x58] sm:$0xff] }
 0x2f5   : > { %1021 = vmatpush1.msra.mxu0 %v995_v46  ;;  %1750 = vmatprep.subr.mxu1 %v1942_v41  ;;  %v1207_v46 = vld [vmem:[%s3250_s13 + $0xd8] sm:$0xff] }
 0x2f6   : > { %1022 = vmatprep.subr.mxu0 %v993_v48  ;;  %1751 = vmatpush3.msra.mxu1 %v997_v49  ;;  %v1225_v48 = vld [vmem:[%s3250_s13 + $0x168] sm:$0xff]  ;;  %v1206_v49 = vld [vmem:[%s3250_s13 + $0xd0] sm:$0xff] }
 0x2f7   : > { %1023 = vmatpush1.msra.mxu0 %v992_v50  ;;  %1752 = vmatprep.subr.mxu1 %v1942_v41  ;;  %v1190_v50 = vld [vmem:[%s3250_s13 + $0x50] sm:$0xff] }
 0x2f8   : > { %1024 = vmatprep.subr.mxu0 %v990_v51  ;;  %1753 = vmatpush3.msra.mxu1 %v994_v52  ;;  %v1224_v51 = vld [vmem:[%s3250_s13 + $0x160] sm:$0xff]  ;;  %v1205_v52 = vld [vmem:[%s3250_s13 + $0xc8] sm:$0xff] }
 0x2f9   : > { %1025 = vmatpush1.msra.mxu0 %v989_v53  ;;  %1754 = vmatprep.subr.mxu1 %v1942_v41  ;;  %v1189_v53 = vld [vmem:[%s3250_s13 + $0x48] sm:$0xff] }
 0x2fa   : > { %1026 = vmatprep.subr.mxu0 %v987_v54  ;;  %1755 = vmatpush3.msra.mxu1 %v991_v55  ;;  %v1223_v54 = vld [vmem:[%s3250_s13 + $0x158] sm:$0xff]  ;;  %v1204_v55 = vld [vmem:[%s3250_s13 + $0xc0] sm:$0xff] }
 0x2fb   : > { %1027 = vmatpush1.msra.mxu0 %v986_v56  ;;  %1756 = vmatprep.subr.mxu1 %v1942_v41  ;;  %v1188_v56 = vld [vmem:[%s3250_s13 + $0x40] sm:$0xff] }
 0x2fc   : > { %1028 = vmatprep.subr.mxu0 %v984_v57  ;;  %1757 = vmatpush3.msra.mxu1 %v988_v58  ;;  %v1222_v57 = vld [vmem:[%s3250_s13 + $0x150] sm:$0xff]  ;;  %v1203_v58 = vld [vmem:[%s3250_s13 + $0xb8] sm:$0xff] }
 0x2fd   : > { %1029 = vmatpush1.msra.mxu0 %v983_v60  ;;  %1758 = vmatprep.subr.mxu1 %v1942_v41  ;;  %v1187_v60 = vld [vmem:[%s3250_s13 + $0x38] sm:$0xff] }
 0x2fe   : > { %1030 = vmatprep.subr.mxu0 %v981_v61  ;;  %1759 = vmatpush3.msra.mxu1 %v985_v62  ;;  %v1221_v61 = vld [vmem:[%s3250_s13 + $0x148] sm:$0xff]  ;;  %v1202_v62 = vld [vmem:[%s3250_s13 + $0xb0] sm:$0xff] }
 0x2ff   : > { %1031 = vmatpush1.msra.mxu0 %v980_v63  ;;  %1760 = vmatprep.subr.mxu1 %v1942_v41  ;;  %v1186_v63 = vld [vmem:[%s3250_s13 + $0x30] sm:$0xff] }
 0x300   : > { %1032 = vmatprep.subr.mxu0 %v978_v2  ;;  %1761 = vmatpush3.msra.mxu1 %v982_v1  ;;  %v1220_v2 = vld [vmem:[%s3250_s13 + $0x140] sm:$0xff]  ;;  %v1201_v1 = vld [vmem:[%s3250_s13 + $0xa8] sm:$0xff] }
 0x301   : > { %1033 = vmatpush1.msra.mxu0 %v977_v4  ;;  %1762 = vmatprep.subr.mxu1 %v1942_v41  ;;  %v1185_v4 = vld [vmem:[%s3250_s13 + $0x28] sm:$0xff] }
 0x302   : > { %1034 = vmatprep.subr.mxu0 %v975_v5  ;;  %1763 = vmatpush3.msra.mxu1 %v979_v6  ;;  %v1219_v5 = vld [vmem:[%s3250_s13 + $0x138] sm:$0xff]  ;;  %v1200_v6 = vld [vmem:[%s3250_s13 + $0xa0] sm:$0xff] }
 0x303   : > { %1035 = vmatpush1.msra.mxu0 %v974_v7  ;;  %1764 = vmatprep.subr.mxu1 %v1942_v41  ;;  %v1184_v7 = vld [vmem:[%s3250_s13 + $0x20] sm:$0xff] }
 0x304   : > { %1036 = vmatprep.subr.mxu0 %v972_v8  ;;  %1765 = vmatpush3.msra.mxu1 %v976_v9  ;;  %v1218_v8 = vld [vmem:[%s3250_s13 + $0x130] sm:$0xff]  ;;  %v1199_v9 = vld [vmem:[%s3250_s13 + $0x98] sm:$0xff] }
 0x305   : > { %1037 = vmatpush1.msra.mxu0 %v971_v10  ;;  %1766 = vmatprep.subr.mxu1 %v1942_v41  ;;  %v1183_v10 = vld [vmem:[%s3250_s13 + $0x18] sm:$0xff] }
 0x306   : > { %1038 = vmatprep.subr.mxu0 %v969_v11  ;;  %1767 = vmatpush3.msra.mxu1 %v973_v12  ;;  %v1217_v11 = vld [vmem:[%s3250_s13 + $0x128] sm:$0xff]  ;;  %v1198_v12 = vld [vmem:[%s3250_s13 + $0x90] sm:$0xff] }
 0x307   : > { %1039 = vmatpush1.msra.mxu0 %v968_v13  ;;  %1768 = vmatprep.subr.mxu1 %v1942_v41  ;;  %v1182_v13 = vld [vmem:[%s3250_s13 + $0x10] sm:$0xff] }
 0x308   : > { %1040 = vmatprep.subr.mxu0 %v966_v14  ;;  %1769 = vmatpush3.msra.mxu1 %v970_v15  ;;  %v1216_v14 = vld [vmem:[%s3250_s13 + $0x120] sm:$0xff]  ;;  %v1197_v15 = vld [vmem:[%s3250_s13 + $0x88] sm:$0xff] }
 0x309   : > { %1041 = vmatpush1.msra.mxu0 %v965_v16  ;;  %1770 = vmatprep.subr.mxu1 %v1942_v41  ;;  %v1181_v16 = vld [vmem:[%s3250_s13 + $0x8] sm:$0xff] }
 0x30a   : > { %1042 = vmatprep.subr.mxu0 %v963_v17  ;;  %1771 = vmatpush3.msra.mxu1 %v967_v18  ;;  %v1215_v17 = vld [vmem:[%s3250_s13 + $0x118] sm:$0xff]  ;;  %v1196_v18 = vld [vmem:[%s3250_s13 + $0x80] sm:$0xff] }
 0x30b   : > { %1043 = vmatpush1.msra.mxu0 %v962_v19  ;;  %1772 = vmatprep.subr.mxu1 %v1942_v41  ;;  %v1180_v19 = vld [vmem:[%s3250_s13] sm:$0xff] }
 0x30c   : > { %1044 = vmatprep.subr.mxu0 %v960_v21  ;;  %1773 = vmatpush3.msra.mxu1 %v964_v22  ;;  %v1214_v21 = vld [vmem:[%s3250_s13 + $0x110] sm:$0xff]  ;;  %v1213_v22 = vld [vmem:[%s3250_s13 + $0x108] sm:$0xff] }
 0x30d   : > { %1045 = vmatpush1.msra.mxu0 %v959_v23  ;;  %1774 = vmatprep.subr.mxu1 %v1942_v41  ;;  %v1212_v23 = vld [vmem:[%s3250_s13 + $0x100] sm:$0xff] }
 0x30e   : > { %1046 = vmatprep.subr.mxu0 %v957_v24  ;;  %1775 = vmatpush3.msra.mxu1 %v961_v25  ;;  %v795_v24 = vld [vmem:[%s3248_s11] sm:$0x7] }
 0x30f   : > { %1047 = vmatpush1.msra.mxu0 %v956_v26  ;;  %1776 = vmatprep.subr.mxu1 %v1942_v41  ;;  %v1001_v26 = vld [vmem:[%s3249_s12] sm:$0x7] }
 0x310   : > { %1048 = vmatprep.subr.mxu0 %v954_v27  ;;  %1777 = vmatpush3.msra.mxu1 %v958_v28  ;;  %v800_v28 = vrot.slane %v795_v24, %v2435_v59 }
 0x311   : > { %1049 = vmatpush1.msra.mxu0 %v953_v29  ;;  %1778 = vmatprep.subr.mxu1 %v1942_v41  ;;  %v1006_v29 = vrot.slane %v1001_v26, %v2435_v59 }
 0x312   : > { %1083 = vmatmul.mubr.f32.vlgmr.msra.gmra.mxu0 %v1932_v39  ;;  %1779 = vmatpush3.msra.mxu1 %v955_v30 }
 0x313   : > { %1780 = vmatprep.mubr.msk.f32.mxu1 %vm1943_vm2, %v1942_v41  ;;  %1783 = vmatprep.subr.mxu1 %v1942_v41 }
 0x314   : > { %1781 = vmatmul.mubr.f32.vlgmr.msra.gmra.mxu1 %v1932_v39  ;;  %1556 = vmatprep.subr.mxu0 %v1211_v31 }
 0x315   : > { %1815 = vmatprep.mubr.msk.f32.mxu1 %vm1943_vm2, %v1942_v41  ;;  %1557 = vmatpush3.msra.mxu0 %v1195_v32 }
 0x316   : > { %1558 = vmatprep.subr.mxu0 %v1210_v33  ;;  %1784 = vmatpush3.msra.mxu1 %v1227_v40 }
 0x317   : > { %1559 = vmatpush3.msra.mxu0 %v1194_v34  ;;  %1785 = vmatprep.subr.mxu1 %v1942_v41 }
 0x318   : > { %1560 = vmatprep.subr.mxu0 %v1209_v37  ;;  %1786 = vmatpush3.msra.mxu1 %v1226_v45  ;;  %v1010_v37 = vrot.slane %v1001_v26, %v2445_v3 }
 0x319   : > { %1561 = vmatpush3.msra.mxu0 %v1193_v38  ;;  %1787 = vmatprep.subr.mxu1 %v1942_v41 }
 0x31a   : > { %1562 = vmatprep.subr.mxu0 %v1208_v42  ;;  %1788 = vmatpush3.msra.mxu1 %v1225_v48  ;;  %v804_v42 = vrot.slane %v795_v24, %v2445_v3 }
 0x31b   : > { %1563 = vmatpush3.msra.mxu0 %v1192_v44  ;;  %1789 = vmatprep.subr.mxu1 %v1942_v41 }
 0x31c   : > { %1564 = vmatprep.subr.mxu0 %v1207_v46  ;;  %1790 = vmatpush3.msra.mxu1 %v1224_v51 }
 0x31d   : > { %1565 = vmatpush3.msra.mxu0 %v1191_v47  ;;  %1791 = vmatprep.subr.mxu1 %v1942_v41 }
 0x31e   : > { %1566 = vmatprep.subr.mxu0 %v1206_v49  ;;  %1792 = vmatpush3.msra.mxu1 %v1223_v54 }
 0x31f   : > { %1567 = vmatpush3.msra.mxu0 %v1190_v50  ;;  %1793 = vmatprep.subr.mxu1 %v1942_v41 }
 0x320   : > { %1568 = vmatprep.subr.mxu0 %v1205_v52  ;;  %1794 = vmatpush3.msra.mxu1 %v1222_v57 }
 0x321   : > { %1569 = vmatpush3.msra.mxu0 %v1189_v53  ;;  %1795 = vmatprep.subr.mxu1 %v1942_v41  ;;  %v1014_v53 = vrot.slane %v1001_v26, %v2449_v20 }
 0x322   : > { %1570 = vmatprep.subr.mxu0 %v1204_v55  ;;  %1796 = vmatpush3.msra.mxu1 %v1221_v61  ;;  %v808_v55 = vrot.slane %v795_v24, %v2449_v20 }
 0x323   : > { %1571 = vmatpush3.msra.mxu0 %v1188_v56  ;;  %1797 = vmatprep.subr.mxu1 %v1942_v41 }
 0x324   : > { %1572 = vmatprep.subr.mxu0 %v1203_v58  ;;  %1798 = vmatpush3.msra.mxu1 %v1220_v2 }
 0x325   : > { %1573 = vmatpush3.msra.mxu0 %v1187_v60  ;;  %1799 = vmatprep.subr.mxu1 %v1942_v41 }
 0x326   : > { %1574 = vmatprep.subr.mxu0 %v1202_v62  ;;  %1800 = vmatpush3.msra.mxu1 %v1219_v5 }
 0x327   : > { %1575 = vmatpush3.msra.mxu0 %v1186_v63  ;;  %1801 = vmatprep.subr.mxu1 %v1942_v41 }
 0x328   : > { %1576 = vmatprep.subr.mxu0 %v1201_v1  ;;  %1802 = vmatpush3.msra.mxu1 %v1218_v8 }
 0x329   : > { %1577 = vmatpush3.msra.mxu0 %v1185_v4  ;;  %1803 = vmatprep.subr.mxu1 %v1942_v41 }
 0x32a   : > { %1578 = vmatprep.subr.mxu0 %v1200_v6  ;;  %1804 = vmatpush3.msra.mxu1 %v1217_v11  ;;  %v1433_v11 = vld [vmem:[%s3251_s14] ss:$0 sm:$0xff] }
 0x32b   : > { %1579 = vmatpush3.msra.mxu0 %v1184_v7  ;;  %1805 = vmatprep.subr.mxu1 %v1942_v41 }
 0x32c   : > { %1580 = vmatprep.subr.mxu0 %v1199_v9  ;;  %1806 = vmatpush3.msra.mxu1 %v1216_v14 }
 0x32d   : > { %1581 = vmatpush3.msra.mxu0 %v1183_v10  ;;  %1807 = vmatprep.subr.mxu1 %v1942_v41 }
 0x32e   : > { %1582 = vmatprep.subr.mxu0 %v1198_v12  ;;  %1808 = vmatpush3.msra.mxu1 %v1215_v17 }
 0x32f   : > { %1583 = vmatpush3.msra.mxu0 %v1182_v13  ;;  %1809 = vmatprep.subr.mxu1 %v1942_v41 }
 0x330   : > { %1584 = vmatprep.subr.mxu0 %v1197_v15  ;;  %1810 = vmatpush3.msra.mxu1 %v1214_v21  ;;  %v1391_v15 = vld [vmem:[%s1390_s22] sm:$0xff]  ;;  %v1395_v21 = vstv %s1394_s23 }
 0x331   : > { %1585 = vmatpush3.msra.mxu0 %v1181_v16  ;;  %1811 = vmatprep.subr.mxu1 %v1942_v41  ;;  %v1392_v16 = vstv %s1389_s16 }
 0x332   : > { %1586 = vmatprep.subr.mxu0 %v1196_v18  ;;  %1812 = vmatpush3.msra.mxu1 %v1213_v22  ;;  %v1393_v17 = vmul.f32 %v1392_v16, %v1391_v15 }
 0x333   : > { %1587 = vmatpush3.msra.mxu0 %v1180_v19  ;;  %1813 = vmatprep.subr.mxu1 %v1942_v41 }
 0x334   : > { %1814 = vmatpush3.msra.mxu1 %v1212_v23 }
 0x335   : > { %1816 = vmatmul.mubr.f32.vlgmr.msra.gmra.mxu1 %v3253_v35 }
 0x3b2   : > { %v1536_v25 = vpop.f32.mrf.mxu0  ;;  %v878_v27 = vpop.f32.mrf.mxu1 }
 0x3b3   : > { %v879_v33 = vadd.f32 %v878_v27, %v800_v28 }
 0x3b4   : > { %v1537_v30 = vpop.f32.mrf.mxu0  ;;  %v880_v31 = vpop.f32.mrf.mxu1 }
 0x3b5   : > { %v881_v48 = vadd.f32 %v880_v31, %v804_v42  ;;  %v1538_v56 = vadd.f32 %v1537_v30, %v1536_v25 }
 0x3b7   : > { %v950_v61 = vadd.f32 %v1538_v56, %v808_v55 }
 0x3d2   : > { %v1084_v32 = vpop.f32.mrf.mxu0 }
 0x3d3   : > { %v1085_v34 = vadd.f32 %v1084_v32, %v1006_v29 }
 0x3d4   : > { %v1086_v38 = vpop.f32.mrf.mxu0  ;;  %v1155_v40 = vpop.f32.mrf.mxu1 }
 0x3d5   : > { %v1159_v44 = vadd.f32 %v1085_v34, %v879_v33  ;;  %v1087_v47 = vadd.f32 %v1086_v38, %v1010_v37  ;;  %v1156_v58 = vadd.f32 %v1155_v40, %v1014_v53 }
 0x3d6   : > { %v1782_v45 = vpop.f32.mrf.mxu1 }
 0x3d7   : > { %v1431_v46 = vmul.f32 -1.442695, %v1159_v44  ;;  %v1166_v49 = vadd.f32 %v1087_v47, %v881_v48 }
 0x3d9   : > { %1874 = vpow2.f32 %v1431_v46  ;;  %v1432_v50 = vmul.f32 -1.442695, %v1166_v49 }
 0x3db   : > { %1876 = vpow2.f32 %v1432_v50 }
 0x3e6   : > { %v1875_v51 = vpop.eup %1874 }
 0x3e7   : > { %v1163_v52 = vadd.f32 1.0, %v1875_v51 }
 0x3e8   : > { %v1877_v54 = vpop.eup %1876 }
 0x3e9   : > { %1878 = vrcp.f32 %v1163_v52  ;;  %v1170_v57 = vadd.f32 1.0, %v1877_v54 }
 0x3eb   : > { %1880 = vrcp.f32 %v1170_v57 }
 0x3f5   : > { %v1371_v7 = vpop.f32.mrf.mxu1 }
 0x3f6   : > { %v1879_v60 = vpop.eup %1878 }
 0x3f7   : > { %v1173_v62 = vmul.f32 %v1879_v60, %v1156_v58  ;;  %v1817_v8 = vpop.f32.mrf.mxu1 }
 0x3f8   : > { %v1881_v2 = vpop.eup %1880 }
 0x3f9   : > { %v1174_v63 = vadd.f32 %v1173_v62, %v950_v61  ;;  %v1176_v1 = vsub.f32 1.0, %v1881_v2  ;;  %v1178_v6 = vmul.f32 %v1932_v39, %v1881_v2 }
 0x3fb   : > { %1882 = vtanh.f32 %v1174_v63 }
 0x408   : > { %v1883_v4 = vpop.eup %1882 }
 0x409   : > { %v1177_v5 = vmul.f32 %v1883_v4, %v1176_v1 }
 0x40b   : > { %v1179_v39 = vadd.f32 %v1178_v6, %v1177_v5  }
 0x40d   : > { %1299 = vmatprep.mubr.f32.mxu0 %v1179_v39 }
 0x40e   : > { %1300 = vmatmul.mubr.f32.vlgmr.msra.gmra.mxu0 %v2873_v43 }
 0x4ce   : > { %v1588_v9 = vpop.f32.mrf.mxu0 }
 0x4d0   : > { %v1589_v10 = vpop.f32.mrf.mxu0 }
 0x4d1   : > { %v1590_v12 = vadd.f32 %v1589_v10, %v1588_v9 }
 0x4d3   : > { %v1302_v13 = vadd.f32 %v1590_v12, %v1433_v11 }
 0x4d5   : > { %v1372_v14 = vadd.f32 %v1371_v7, %v1302_v13 }
 0x4d7   : > { %1377 = vst [vmem:[%s1376_s18] sm:$0xff] %v1372_v14  ;;  %v1378_v43 = vsel %vm603_vm1, %v1372_v14, -inf }
 0x4d8   : > { %1379 = vmax.xlane.f32.xlu0 %v1378_v43 }
 0x561   : > { %v1380_v18 = vpop.xlane.xlu0 %1379 }
 0x562   : > { %vm1381_vm3 = vcmp.eq.f32.partialorder %v1378_v43, %v1380_v18 }
 0x563   : > { %v1382_v19 = vsel %vm1381_vm3, %v602_v0, 128.0 }
 0x564   : > { %1383 = vmin.xlane.f32.xlu0 %v1382_v19 }
 0x5ed   : > { %v1384_v22 = vpop.xlane.xlu0 %1383 }
 0x5ee   : > { %vm1385_vm4 = vcmp.eq.f32.partialorder %v602_v0, %v1384_v22  ;;  %609 = sbr.rel (!%p607_p6) target bundleno = 528 (0x210), region = 112 }
 0x5ef   : > { %v1435_v23 = vsel %vm1385_vm4, 1.0, %v1942_v41 }
 0x5f0   : > { %v1396_v24 = vmul.f32 %v1435_v23, %v1395_v21 }
 0x5f2   : > { %v1397_v37 = vadd.f32 %v1396_v24, %v1393_v17  }
 0x5f3   :  { %1402 = vsyncpa [#allocation3], 1 }

</bundles_post_ra>
